<compile_context>
chip_gen: v7x
topology: tpu7x:2x2x1
jax: 0.10.0
libtpu: 0.0.40
codegen_flags: <defaults>
</compile_context>

<pallas_src>
import functools

import jax
import jax.numpy as jnp
import numpy as np
from jax.experimental import pallas as pl
from jax.experimental.pallas import tpu as pltpu


def make_kernel(num_layers, seq_len, batch_p, in_dim, hidden):
    """batch_p is the sublane-padded batch (multiple of 8)."""
    H = hidden
    Bp = batch_p
    dot = functools.partial(jnp.dot, preferred_element_type=jnp.float32)

    def kernel(*refs):
        # refs layout:
        #   x_flat (S*Bp, I)
        #   layer 0:      wi_f0 (I,3H), wh_f0 (H,3H), b_f0 (1,3H),
        #                 wi_b0 (I,2H), b_b0 (1,2H)
        #   layers >= 1:  w_fused (2H,4H), b_fused (1,4H),
        #                 wi_b (H,2H),  b_b (1,2H)
        #   fc_w (2H,H), fc_b (1,H)
        #   out (Bp,H)
        x_ref = refs[0]
        idx = 1
        wi_f0_ref, wh_f0_ref, b_f0_ref, wi_b0_ref, b_b0_ref = refs[idx:idx + 5]
        idx += 5
        upper = []
        for _ in range(num_layers - 1):
            upper.append(tuple(refs[idx:idx + 4]))
            idx += 4
        fc_w_ref = refs[idx]
        fc_b_ref = refs[idx + 1]
        out_ref = refs[idx + 2]

        # ---- hoisted layer-0 fwd input projection (+ bias), all timesteps ----
        x_proj = dot(x_ref[...], wi_f0_ref[...]) + b_f0_ref[...]   # (S*Bp, 3H)

        # hoisted, pre-broadcast fused biases for layers >= 1
        b_up_bc = [jnp.broadcast_to(u[1][...], (Bp, 4 * H)) for u in upper]

        # ---- forward recurrence, fully statically unrolled ----
        hs = [jnp.zeros((Bp, H), jnp.float32) for _ in range(num_layers)]
        for t in range(seq_len):
            # layer 0: ih precomputed, single (Bp,H)@(H,3H) recurrent matmul
            ih = x_proj[t * Bp:(t + 1) * Bp]                  # sublane-aligned view
            hh = dot(hs[0], wh_f0_ref[...])                   # (Bp, 3H)
            r = jax.nn.sigmoid(ih[:, :H] + hh[:, :H])
            z = jax.nn.sigmoid(ih[:, H:2 * H] + hh[:, H:2 * H])
            n = jnp.tanh(ih[:, 2 * H:] + r * hh[:, 2 * H:])
            hs[0] = (1.0 - z) * n + z * hs[0]
            inp = hs[0]

            # layers >= 1: ONE fused (Bp,2H)@(2H,4H) matmul per layer-step
            for l in range(1, num_layers):
                w_ref = upper[l - 1][0]
                xh = jnp.concatenate([inp, hs[l]], axis=1)    # (Bp, 2H)
                g = dot(xh, w_ref[...]) + b_up_bc[l - 1]      # (Bp, 4H)
                r = jax.nn.sigmoid(g[:, :H])
                z = jax.nn.sigmoid(g[:, H:2 * H])
                n = jnp.tanh(g[:, 2 * H:3 * H] + r * g[:, 3 * H:])
                hs[l] = (1.0 - z) * n + z * hs[l]
                inp = hs[l]
        h_fwd_last = hs[-1]

        # ---- backward direction: one step per layer from h == 0 on x[:, -1] ----
        # (r gate dead because h == 0; only z and n columns are packed.)
        inp = x_ref[(seq_len - 1) * Bp:seq_len * Bp, :]       # (Bp, I)
        ih = dot(inp, wi_b0_ref[...]) + b_b0_ref[...]         # (Bp, 2H)
        z = jax.nn.sigmoid(ih[:, :H])
        n = jnp.tanh(ih[:, H:])
        inp = (1.0 - z) * n
        for l in range(1, num_layers):
            wi_b_ref, b_b_ref = upper[l - 1][2], upper[l - 1][3]
            ih = dot(inp, wi_b_ref[...]) + b_b_ref[...]       # (Bp, 2H)
            z = jax.nn.sigmoid(ih[:, :H])
            n = jnp.tanh(ih[:, H:])
            inp = (1.0 - z) * n
        h_bwd_last = inp

        # ---- fc: single (Bp, 2H) @ (2H, H) matmul ----
        hcat = jnp.concatenate([h_fwd_last, h_bwd_last], axis=1)
        out = dot(hcat, fc_w_ref[...]) + fc_b_ref[...]
        out_ref[...] = out.astype(out_ref.dtype)

    return kernel


def custom_gru_pallas(x, params, num_layers, hidden_dim):
    B, S, I = x.shape
    H = hidden_dim

    # Pad batch to the f32 sublane count (8): every per-step tile is (8, lanes)
    # aligned; padded rows carry zeros and are sliced off at the end.
    Bp = max(8, ((B + 7) // 8) * 8)
    x_pad = jnp.zeros((Bp, S, I), jnp.float32).at[:B].set(x.astype(jnp.float32))
    # time-major, flattened: rows ordered [t0 b0..b(Bp-1), t1 b0.., ...]
    x_flat = jnp.transpose(x_pad, (1, 0, 2)).reshape(S * Bp, I)

    def stack3_wi(w):   # (3, in, H) -> (in, 3H), gate order (r, z, n)
        return jnp.concatenate([w[0], w[1], w[2]], axis=1)

    def stack3_b(b):    # (3, 1, H) -> (1, 3H)
        return jnp.concatenate([b[0], b[1], b[2]], axis=1)

    args = [x_flat]

    # ---- layer 0: separate ih/hh weights (ih projection is hoisted) ----
    wi_f0, wh_f0, b_f0 = params["cells"][0]["fwd"]
    wi_b0, _, b_b0 = params["cells"][0]["bwd"]       # bwd W_h provably unused
    args += [stack3_wi(wi_f0), stack3_wi(wh_f0), stack3_b(b_f0),
             jnp.concatenate([wi_b0[1], wi_b0[2]], axis=1),   # z,n only: (I, 2H)
             jnp.concatenate([b_b0[1], b_b0[2]], axis=1)]     # (1, 2H)

    # ---- layers >= 1: fused [inp, h] -> 4H weight; bwd z,n only ----
    zeros_hh = jnp.zeros((H, H), jnp.float32)
    zeros_b = jnp.zeros((1, H), jnp.float32)
    for l in range(1, num_layers):
        wi, wh, b = params["cells"][l]["fwd"]
        w_fused = jnp.concatenate([
            jnp.concatenate([wi[0], wh[0]], axis=0),      # r
            jnp.concatenate([wi[1], wh[1]], axis=0),      # z
            jnp.concatenate([wi[2], zeros_hh], axis=0),   # n_ih
            jnp.concatenate([zeros_hh, wh[2]], axis=0),   # n_hh
        ], axis=1)                                        # (2H, 4H)
        b_fused = jnp.concatenate([b[0], b[1], b[2], zeros_b], axis=1)  # (1, 4H)
        wi_b, _, b_b = params["cells"][l]["bwd"]
        args += [w_fused, b_fused,
                 jnp.concatenate([wi_b[1], wi_b[2]], axis=1),   # (H, 2H)
                 jnp.concatenate([b_b[1], b_b[2]], axis=1)]     # (1, 2H)

    fc_w = params["fc_w"]                                 # (H, 2H) torch Linear layout
    args += [jnp.transpose(fc_w), params["fc_b"].reshape(1, H)]

    kernel = make_kernel(num_layers, S, Bp, I, H)
    out_p = pl.pallas_call(
        kernel,
        out_shape=jax.ShapeDtypeStruct((Bp, H), jnp.float32),
        in_specs=[pl.BlockSpec(memory_space=pltpu.MemorySpace.VMEM)] * len(args),
        out_specs=pl.BlockSpec(memory_space=pltpu.MemorySpace.VMEM),
    )(*args)
    return out_p[:B]
    # TODO(synk): if ever scaled to large B/H, add a batch grid
    # (dimension_semantics=("parallel",) for v7x's 2 TCs), stream S via
    # BlockSpec instead of all-in-VMEM residency, budget VMEM against v7x's
    # 64 MiB, and cast weights to bf16 on v6e/v7x.


# ---------------- pure-JAX reference (mirrors the PyTorch forward) ----------
def ref_forward(x, params, num_layers, hidden_dim):
    B, S, _ = x.shape

    def cell(x_, h_, wi, wh, b):
        r = jax.nn.sigmoid(x_ @ wi[0] + h_ @ wh[0] + b[0])
        z = jax.nn.sigmoid(x_ @ wi[1] + h_ @ wh[1] + b[1])
        n = jnp.tanh(x_ @ wi[2] + r * (h_ @ wh[2]) + b[2])
        return (1 - z) * n + z * h_

    h = [jnp.zeros((B, hidden_dim), jnp.float32) for _ in range(num_layers)]
    h_bi = [jnp.zeros((B, hidden_dim), jnp.float32) for _ in range(num_layers)]
    outputs, outputs_bi = [], []
    for t in range(S):
        inp = x[:, t, :]
        for layer in range(num_layers):
            wi, wh, b = params["cells"][layer]["fwd"]
            h[layer] = cell(inp, h[layer], wi, wh, b)
            inp = h[layer]
        outputs.append(inp)
    for t in reversed(range(S)):
        inp = x[:, t, :]
        for layer in range(num_layers):
            wi, wh, b = params["cells"][layer]["bwd"]
            h_bi[layer] = cell(inp, h_bi[layer], wi, wh, b)
            inp = h_bi[layer]
        outputs_bi.append(inp)
    outputs = jnp.stack(outputs, axis=1)
    outputs_bi = jnp.stack(outputs_bi[::-1], axis=1)
    outputs = jnp.concatenate([outputs, outputs_bi], axis=2)
    last = outputs[:, -1, :]
    return last @ params["fc_w"].T + params["fc_b"]


def init_params(key, input_dim, hidden_dim, num_layers):
    params = {"cells": []}
    for layer in range(num_layers):
        in_dim = input_dim if layer == 0 else hidden_dim
        layer_p = {}
        for d in ("fwd", "bwd"):
            key, k1, k2, k3 = jax.random.split(key, 4)
            wi = jax.random.normal(k1, (3, in_dim, hidden_dim), jnp.float32)
            wh = jax.random.normal(k2, (3, hidden_dim, hidden_dim), jnp.float32)
            b = jax.random.normal(k3, (3, 1, hidden_dim), jnp.float32)
            layer_p[d] = (wi, wh, b)
        params["cells"].append(layer_p)
    key, kf1, kf2 = jax.random.split(key, 3)
    params["fc_w"] = jax.random.normal(
        kf1, (hidden_dim, 2 * hidden_dim), jnp.float32) * 0.1
    params["fc_b"] = jax.random.normal(kf2, (hidden_dim,), jnp.float32) * 0.1
    return params


if __name__ == "__main__":
    batch, seq_len, input_dim, hidden_dim, num_layers = 2, 8, 16, 32, 2

    key = jax.random.PRNGKey(0)
    kx, kp = jax.random.split(key)
    x = jax.random.normal(kx, (batch, seq_len, input_dim), jnp.float32)
    params = init_params(kp, input_dim, hidden_dim, num_layers)

    out = custom_gru_pallas(x, params, num_layers, hidden_dim)
    out = jax.block_until_ready(out)

    ref = jax.block_until_ready(ref_forward(x, params, num_layers, hidden_dim))
    np.testing.assert_allclose(np.asarray(out), np.asarray(ref),
                               rtol=5e-3, atol=5e-3)
    print("KERNEL_OK")
</pallas_src>

<mosaic_0001>
module attributes {stable_mosaic.version = 11 : i64} {
  func.func @kernel(%arg0: memref<64x16xf32, #tpu.memory_space<vmem>>, %arg1: memref<16x96xf32, #tpu.memory_space<vmem>>, %arg2: memref<32x96xf32, #tpu.memory_space<vmem>>, %arg3: memref<1x96xf32, #tpu.memory_space<vmem>>, %arg4: memref<16x64xf32, #tpu.memory_space<vmem>>, %arg5: memref<1x64xf32, #tpu.memory_space<vmem>>, %arg6: memref<64x128xf32, #tpu.memory_space<vmem>>, %arg7: memref<1x128xf32, #tpu.memory_space<vmem>>, %arg8: memref<32x64xf32, #tpu.memory_space<vmem>>, %arg9: memref<1x64xf32, #tpu.memory_space<vmem>>, %arg10: memref<64x32xf32, #tpu.memory_space<vmem>>, %arg11: memref<1x32xf32, #tpu.memory_space<vmem>>, %arg12: memref<8x32xf32, #tpu.memory_space<vmem>>) attributes {dimension_semantics = [], scalar_prefetch = 0 : i64, scratch_operands = 0 : i64, tpu.core_type = #tpu.core_type<tc>} {
    %c0 = arith.constant 0 : index
    %c0_0 = arith.constant 0 : index
    %0 = vector.load %arg0[%c0, %c0_0] : memref<64x16xf32, #tpu.memory_space<vmem>>, vector<64x16xf32>
    %c0_1 = arith.constant 0 : index
    %c0_2 = arith.constant 0 : index
    %1 = vector.load %arg1[%c0_1, %c0_2] : memref<16x96xf32, #tpu.memory_space<vmem>>, vector<16x96xf32>
    %cst = arith.constant dense<0.000000e+00> : vector<64x96xf32>
    %2 = tpu.matmul %0, %1, %cst {dimension_numbers = #tpu.dot_dimension_numbers<[1], [0], [0], [1], [0, 0, 1, 1], [], []>} : vector<64x16xf32>, vector<16x96xf32>, vector<64x96xf32> -> vector<64x96xf32>
    %c0_3 = arith.constant 0 : index
    %c0_4 = arith.constant 0 : index
    %3 = vector.load %arg3[%c0_3, %c0_4] : memref<1x96xf32, #tpu.memory_space<vmem>>, vector<1x96xf32>
    %4 = vector.broadcast %3 : vector<1x96xf32> to vector<64x96xf32>
    %5 = arith.addf %2, %4 : vector<64x96xf32>
    %c0_5 = arith.constant 0 : index
    %c0_6 = arith.constant 0 : index
    %6 = vector.load %arg7[%c0_5, %c0_6] : memref<1x128xf32, #tpu.memory_space<vmem>>, vector<1x128xf32>
    %7 = vector.shape_cast %6 : vector<1x128xf32> to vector<1x128xf32>
    %8 = vector.broadcast %7 : vector<1x128xf32> to vector<8x128xf32>
    %cst_7 = arith.constant 0.000000e+00 : f32
    %9 = vector.broadcast %cst_7 : f32 to vector<8x32xf32>
    %cst_8 = arith.constant 0.000000e+00 : f32
    %10 = vector.broadcast %cst_8 : f32 to vector<8x32xf32>
    %11 = vector.extract_strided_slice %5 {offsets = [0, 0], sizes = [8, 96], strides = [1, 1]} : vector<64x96xf32> to vector<8x96xf32>
    %c0_9 = arith.constant 0 : index
    %c0_10 = arith.constant 0 : index
    %12 = vector.load %arg2[%c0_9, %c0_10] : memref<32x96xf32, #tpu.memory_space<vmem>>, vector<32x96xf32>
    %cst_11 = arith.constant dense<0.000000e+00> : vector<8x96xf32>
    %13 = tpu.matmul %9, %12, %cst_11 {dimension_numbers = #tpu.dot_dimension_numbers<[1], [0], [0], [1], [0, 0, 1, 1], [], []>} : vector<8x32xf32>, vector<32x96xf32>, vector<8x96xf32> -> vector<8x96xf32>
    %14 = vector.extract_strided_slice %11 {offsets = [0, 0], sizes = [8, 32], strides = [1, 1]} : vector<8x96xf32> to vector<8x32xf32>
    %15 = vector.extract_strided_slice %13 {offsets = [0, 0], sizes = [8, 32], strides = [1, 1]} : vector<8x96xf32> to vector<8x32xf32>
    %16 = arith.addf %14, %15 : vector<8x32xf32>
    %17 = arith.negf %16 : vector<8x32xf32>
    %18 = math.exp %17 : vector<8x32xf32>
    %cst_12 = arith.constant 1.000000e+00 : f32
    %19 = vector.broadcast %cst_12 : f32 to vector<8x32xf32>
    %20 = arith.addf %19, %18 : vector<8x32xf32>
    %21 = arith.divf %19, %20 : vector<8x32xf32>
    %22 = vector.extract_strided_slice %11 {offsets = [0, 32], sizes = [8, 32], strides = [1, 1]} : vector<8x96xf32> to vector<8x32xf32>
    %23 = vector.extract_strided_slice %13 {offsets = [0, 32], sizes = [8, 32], strides = [1, 1]} : vector<8x96xf32> to vector<8x32xf32>
    %24 = arith.addf %22, %23 : vector<8x32xf32>
    %25 = arith.negf %24 : vector<8x32xf32>
    %26 = math.exp %25 : vector<8x32xf32>
    %cst_13 = arith.constant 1.000000e+00 : f32
    %27 = vector.broadcast %cst_13 : f32 to vector<8x32xf32>
    %28 = arith.addf %27, %26 : vector<8x32xf32>
    %29 = arith.divf %27, %28 : vector<8x32xf32>
    %30 = vector.extract_strided_slice %11 {offsets = [0, 64], sizes = [8, 32], strides = [1, 1]} : vector<8x96xf32> to vector<8x32xf32>
    %31 = vector.extract_strided_slice %13 {offsets = [0, 64], sizes = [8, 32], strides = [1, 1]} : vector<8x96xf32> to vector<8x32xf32>
    %32 = arith.mulf %21, %31 : vector<8x32xf32>
    %33 = arith.addf %30, %32 : vector<8x32xf32>
    %34 = math.tanh %33 : vector<8x32xf32>
    %cst_14 = arith.constant 1.000000e+00 : f32
    %35 = vector.broadcast %cst_14 : f32 to vector<8x32xf32>
    %36 = arith.subf %35, %29 : vector<8x32xf32>
    %37 = arith.mulf %36, %34 : vector<8x32xf32>
    %38 = arith.mulf %29, %9 : vector<8x32xf32>
    %39 = arith.addf %37, %38 : vector<8x32xf32>
    %40 = tpu.concatenate %39, %10 in 1 : vector<8x32xf32>, vector<8x32xf32> -> vector<8x64xf32>
    %c0_15 = arith.constant 0 : index
    %c0_16 = arith.constant 0 : index
    %41 = vector.load %arg6[%c0_15, %c0_16] : memref<64x128xf32, #tpu.memory_space<vmem>>, vector<64x128xf32>
    %cst_17 = arith.constant dense<0.000000e+00> : vector<8x128xf32>
    %42 = tpu.matmul %40, %41, %cst_17 {dimension_numbers = #tpu.dot_dimension_numbers<[1], [0], [0], [1], [0, 0, 1, 1], [], []>} : vector<8x64xf32>, vector<64x128xf32>, vector<8x128xf32> -> vector<8x128xf32>
    %43 = arith.addf %42, %8 : vector<8x128xf32>
    %44 = vector.extract_strided_slice %43 {offsets = [0, 0], sizes = [8, 32], strides = [1, 1]} : vector<8x128xf32> to vector<8x32xf32>
    %45 = arith.negf %44 : vector<8x32xf32>
    %46 = math.exp %45 : vector<8x32xf32>
    %cst_18 = arith.constant 1.000000e+00 : f32
    %47 = vector.broadcast %cst_18 : f32 to vector<8x32xf32>
    %48 = arith.addf %47, %46 : vector<8x32xf32>
    %49 = arith.divf %47, %48 : vector<8x32xf32>
    %50 = vector.extract_strided_slice %43 {offsets = [0, 32], sizes = [8, 32], strides = [1, 1]} : vector<8x128xf32> to vector<8x32xf32>
    %51 = arith.negf %50 : vector<8x32xf32>
    %52 = math.exp %51 : vector<8x32xf32>
    %cst_19 = arith.constant 1.000000e+00 : f32
    %53 = vector.broadcast %cst_19 : f32 to vector<8x32xf32>
    %54 = arith.addf %53, %52 : vector<8x32xf32>
    %55 = arith.divf %53, %54 : vector<8x32xf32>
    %56 = vector.extract_strided_slice %43 {offsets = [0, 64], sizes = [8, 32], strides = [1, 1]} : vector<8x128xf32> to vector<8x32xf32>
    %57 = vector.extract_strided_slice %43 {offsets = [0, 96], sizes = [8, 32], strides = [1, 1]} : vector<8x128xf32> to vector<8x32xf32>
    %58 = arith.mulf %49, %57 : vector<8x32xf32>
    %59 = arith.addf %56, %58 : vector<8x32xf32>
    %60 = math.tanh %59 : vector<8x32xf32>
    %cst_20 = arith.constant 1.000000e+00 : f32
    %61 = vector.broadcast %cst_20 : f32 to vector<8x32xf32>
    %62 = arith.subf %61, %55 : vector<8x32xf32>
    %63 = arith.mulf %62, %60 : vector<8x32xf32>
    %64 = arith.mulf %55, %10 : vector<8x32xf32>
    %65 = arith.addf %63, %64 : vector<8x32xf32>
    %66 = vector.extract_strided_slice %5 {offsets = [8, 0], sizes = [8, 96], strides = [1, 1]} : vector<64x96xf32> to vector<8x96xf32>
    %c0_21 = arith.constant 0 : index
    %c0_22 = arith.constant 0 : index
    %67 = vector.load %arg2[%c0_21, %c0_22] : memref<32x96xf32, #tpu.memory_space<vmem>>, vector<32x96xf32>
    %cst_23 = arith.constant dense<0.000000e+00> : vector<8x96xf32>
    %68 = tpu.matmul %39, %67, %cst_23 {dimension_numbers = #tpu.dot_dimension_numbers<[1], [0], [0], [1], [0, 0, 1, 1], [], []>} : vector<8x32xf32>, vector<32x96xf32>, vector<8x96xf32> -> vector<8x96xf32>
    %69 = vector.extract_strided_slice %66 {offsets = [0, 0], sizes = [8, 32], strides = [1, 1]} : vector<8x96xf32> to vector<8x32xf32>
    %70 = vector.extract_strided_slice %68 {offsets = [0, 0], sizes = [8, 32], strides = [1, 1]} : vector<8x96xf32> to vector<8x32xf32>
    %71 = arith.addf %69, %70 : vector<8x32xf32>
    %72 = arith.negf %71 : vector<8x32xf32>
    %73 = math.exp %72 : vector<8x32xf32>
    %cst_24 = arith.constant 1.000000e+00 : f32
    %74 = vector.broadcast %cst_24 : f32 to vector<8x32xf32>
    %75 = arith.addf %74, %73 : vector<8x32xf32>
    %76 = arith.divf %74, %75 : vector<8x32xf32>
    %77 = vector.extract_strided_slice %66 {offsets = [0, 32], sizes = [8, 32], strides = [1, 1]} : vector<8x96xf32> to vector<8x32xf32>
    %78 = vector.extract_strided_slice %68 {offsets = [0, 32], sizes = [8, 32], strides = [1, 1]} : vector<8x96xf32> to vector<8x32xf32>
    %79 = arith.addf %77, %78 : vector<8x32xf32>
    %80 = arith.negf %79 : vector<8x32xf32>
    %81 = math.exp %80 : vector<8x32xf32>
    %cst_25 = arith.constant 1.000000e+00 : f32
    %82 = vector.broadcast %cst_25 : f32 to vector<8x32xf32>
    %83 = arith.addf %82, %81 : vector<8x32xf32>
    %84 = arith.divf %82, %83 : vector<8x32xf32>
    %85 = vector.extract_strided_slice %66 {offsets = [0, 64], sizes = [8, 32], strides = [1, 1]} : vector<8x96xf32> to vector<8x32xf32>
    %86 = vector.extract_strided_slice %68 {offsets = [0, 64], sizes = [8, 32], strides = [1, 1]} : vector<8x96xf32> to vector<8x32xf32>
    %87 = arith.mulf %76, %86 : vector<8x32xf32>
    %88 = arith.addf %85, %87 : vector<8x32xf32>
    %89 = math.tanh %88 : vector<8x32xf32>
    %cst_26 = arith.constant 1.000000e+00 : f32
    %90 = vector.broadcast %cst_26 : f32 to vector<8x32xf32>
    %91 = arith.subf %90, %84 : vector<8x32xf32>
    %92 = arith.mulf %91, %89 : vector<8x32xf32>
    %93 = arith.mulf %84, %39 : vector<8x32xf32>
    %94 = arith.addf %92, %93 : vector<8x32xf32>
    %95 = tpu.concatenate %94, %65 in 1 : vector<8x32xf32>, vector<8x32xf32> -> vector<8x64xf32>
    %c0_27 = arith.constant 0 : index
    %c0_28 = arith.constant 0 : index
    %96 = vector.load %arg6[%c0_27, %c0_28] : memref<64x128xf32, #tpu.memory_space<vmem>>, vector<64x128xf32>
    %cst_29 = arith.constant dense<0.000000e+00> : vector<8x128xf32>
    %97 = tpu.matmul %95, %96, %cst_29 {dimension_numbers = #tpu.dot_dimension_numbers<[1], [0], [0], [1], [0, 0, 1, 1], [], []>} : vector<8x64xf32>, vector<64x128xf32>, vector<8x128xf32> -> vector<8x128xf32>
    %98 = arith.addf %97, %8 : vector<8x128xf32>
    %99 = vector.extract_strided_slice %98 {offsets = [0, 0], sizes = [8, 32], strides = [1, 1]} : vector<8x128xf32> to vector<8x32xf32>
    %100 = arith.negf %99 : vector<8x32xf32>
    %101 = math.exp %100 : vector<8x32xf32>
    %cst_30 = arith.constant 1.000000e+00 : f32
    %102 = vector.broadcast %cst_30 : f32 to vector<8x32xf32>
    %103 = arith.addf %102, %101 : vector<8x32xf32>
    %104 = arith.divf %102, %103 : vector<8x32xf32>
    %105 = vector.extract_strided_slice %98 {offsets = [0, 32], sizes = [8, 32], strides = [1, 1]} : vector<8x128xf32> to vector<8x32xf32>
    %106 = arith.negf %105 : vector<8x32xf32>
    %107 = math.exp %106 : vector<8x32xf32>
    %cst_31 = arith.constant 1.000000e+00 : f32
    %108 = vector.broadcast %cst_31 : f32 to vector<8x32xf32>
    %109 = arith.addf %108, %107 : vector<8x32xf32>
    %110 = arith.divf %108, %109 : vector<8x32xf32>
    %111 = vector.extract_strided_slice %98 {offsets = [0, 64], sizes = [8, 32], strides = [1, 1]} : vector<8x128xf32> to vector<8x32xf32>
    %112 = vector.extract_strided_slice %98 {offsets = [0, 96], sizes = [8, 32], strides = [1, 1]} : vector<8x128xf32> to vector<8x32xf32>
    %113 = arith.mulf %104, %112 : vector<8x32xf32>
    %114 = arith.addf %111, %113 : vector<8x32xf32>
    %115 = math.tanh %114 : vector<8x32xf32>
    %cst_32 = arith.constant 1.000000e+00 : f32
    %116 = vector.broadcast %cst_32 : f32 to vector<8x32xf32>
    %117 = arith.subf %116, %110 : vector<8x32xf32>
    %118 = arith.mulf %117, %115 : vector<8x32xf32>
    %119 = arith.mulf %110, %65 : vector<8x32xf32>
    %120 = arith.addf %118, %119 : vector<8x32xf32>
    %121 = vector.extract_strided_slice %5 {offsets = [16, 0], sizes = [8, 96], strides = [1, 1]} : vector<64x96xf32> to vector<8x96xf32>
    %c0_33 = arith.constant 0 : index
    %c0_34 = arith.constant 0 : index
    %122 = vector.load %arg2[%c0_33, %c0_34] : memref<32x96xf32, #tpu.memory_space<vmem>>, vector<32x96xf32>
    %cst_35 = arith.constant dense<0.000000e+00> : vector<8x96xf32>
    %123 = tpu.matmul %94, %122, %cst_35 {dimension_numbers = #tpu.dot_dimension_numbers<[1], [0], [0], [1], [0, 0, 1, 1], [], []>} : vector<8x32xf32>, vector<32x96xf32>, vector<8x96xf32> -> vector<8x96xf32>
    %124 = vector.extract_strided_slice %121 {offsets = [0, 0], sizes = [8, 32], strides = [1, 1]} : vector<8x96xf32> to vector<8x32xf32>
    %125 = vector.extract_strided_slice %123 {offsets = [0, 0], sizes = [8, 32], strides = [1, 1]} : vector<8x96xf32> to vector<8x32xf32>
    %126 = arith.addf %124, %125 : vector<8x32xf32>
    %127 = arith.negf %126 : vector<8x32xf32>
    %128 = math.exp %127 : vector<8x32xf32>
    %cst_36 = arith.constant 1.000000e+00 : f32
    %129 = vector.broadcast %cst_36 : f32 to vector<8x32xf32>
    %130 = arith.addf %129, %128 : vector<8x32xf32>
    %131 = arith.divf %129, %130 : vector<8x32xf32>
    %132 = vector.extract_strided_slice %121 {offsets = [0, 32], sizes = [8, 32], strides = [1, 1]} : vector<8x96xf32> to vector<8x32xf32>
    %133 = vector.extract_strided_slice %123 {offsets = [0, 32], sizes = [8, 32], strides = [1, 1]} : vector<8x96xf32> to vector<8x32xf32>
    %134 = arith.addf %132, %133 : vector<8x32xf32>
    %135 = arith.negf %134 : vector<8x32xf32>
    %136 = math.exp %135 : vector<8x32xf32>
    %cst_37 = arith.constant 1.000000e+00 : f32
    %137 = vector.broadcast %cst_37 : f32 to vector<8x32xf32>
    %138 = arith.addf %137, %136 : vector<8x32xf32>
    %139 = arith.divf %137, %138 : vector<8x32xf32>
    %140 = vector.extract_strided_slice %121 {offsets = [0, 64], sizes = [8, 32], strides = [1, 1]} : vector<8x96xf32> to vector<8x32xf32>
    %141 = vector.extract_strided_slice %123 {offsets = [0, 64], sizes = [8, 32], strides = [1, 1]} : vector<8x96xf32> to vector<8x32xf32>
    %142 = arith.mulf %131, %141 : vector<8x32xf32>
    %143 = arith.addf %140, %142 : vector<8x32xf32>
    %144 = math.tanh %143 : vector<8x32xf32>
    %cst_38 = arith.constant 1.000000e+00 : f32
    %145 = vector.broadcast %cst_38 : f32 to vector<8x32xf32>
    %146 = arith.subf %145, %139 : vector<8x32xf32>
    %147 = arith.mulf %146, %144 : vector<8x32xf32>
    %148 = arith.mulf %139, %94 : vector<8x32xf32>
    %149 = arith.addf %147, %148 : vector<8x32xf32>
    %150 = tpu.concatenate %149, %120 in 1 : vector<8x32xf32>, vector<8x32xf32> -> vector<8x64xf32>
    %c0_39 = arith.constant 0 : index
    %c0_40 = arith.constant 0 : index
    %151 = vector.load %arg6[%c0_39, %c0_40] : memref<64x128xf32, #tpu.memory_space<vmem>>, vector<64x128xf32>
    %cst_41 = arith.constant dense<0.000000e+00> : vector<8x128xf32>
    %152 = tpu.matmul %150, %151, %cst_41 {dimension_numbers = #tpu.dot_dimension_numbers<[1], [0], [0], [1], [0, 0, 1, 1], [], []>} : vector<8x64xf32>, vector<64x128xf32>, vector<8x128xf32> -> vector<8x128xf32>
    %153 = arith.addf %152, %8 : vector<8x128xf32>
    %154 = vector.extract_strided_slice %153 {offsets = [0, 0], sizes = [8, 32], strides = [1, 1]} : vector<8x128xf32> to vector<8x32xf32>
    %155 = arith.negf %154 : vector<8x32xf32>
    %156 = math.exp %155 : vector<8x32xf32>
    %cst_42 = arith.constant 1.000000e+00 : f32
    %157 = vector.broadcast %cst_42 : f32 to vector<8x32xf32>
    %158 = arith.addf %157, %156 : vector<8x32xf32>
    %159 = arith.divf %157, %158 : vector<8x32xf32>
    %160 = vector.extract_strided_slice %153 {offsets = [0, 32], sizes = [8, 32], strides = [1, 1]} : vector<8x128xf32> to vector<8x32xf32>
    %161 = arith.negf %160 : vector<8x32xf32>
    %162 = math.exp %161 : vector<8x32xf32>
    %cst_43 = arith.constant 1.000000e+00 : f32
    %163 = vector.broadcast %cst_43 : f32 to vector<8x32xf32>
    %164 = arith.addf %163, %162 : vector<8x32xf32>
    %165 = arith.divf %163, %164 : vector<8x32xf32>
    %166 = vector.extract_strided_slice %153 {offsets = [0, 64], sizes = [8, 32], strides = [1, 1]} : vector<8x128xf32> to vector<8x32xf32>
    %167 = vector.extract_strided_slice %153 {offsets = [0, 96], sizes = [8, 32], strides = [1, 1]} : vector<8x128xf32> to vector<8x32xf32>
    %168 = arith.mulf %159, %167 : vector<8x32xf32>
    %169 = arith.addf %166, %168 : vector<8x32xf32>
    %170 = math.tanh %169 : vector<8x32xf32>
    %cst_44 = arith.constant 1.000000e+00 : f32
    %171 = vector.broadcast %cst_44 : f32 to vector<8x32xf32>
    %172 = arith.subf %171, %165 : vector<8x32xf32>
    %173 = arith.mulf %172, %170 : vector<8x32xf32>
    %174 = arith.mulf %165, %120 : vector<8x32xf32>
    %175 = arith.addf %173, %174 : vector<8x32xf32>
    %176 = vector.extract_strided_slice %5 {offsets = [24, 0], sizes = [8, 96], strides = [1, 1]} : vector<64x96xf32> to vector<8x96xf32>
    %c0_45 = arith.constant 0 : index
    %c0_46 = arith.constant 0 : index
    %177 = vector.load %arg2[%c0_45, %c0_46] : memref<32x96xf32, #tpu.memory_space<vmem>>, vector<32x96xf32>
    %cst_47 = arith.constant dense<0.000000e+00> : vector<8x96xf32>
    %178 = tpu.matmul %149, %177, %cst_47 {dimension_numbers = #tpu.dot_dimension_numbers<[1], [0], [0], [1], [0, 0, 1, 1], [], []>} : vector<8x32xf32>, vector<32x96xf32>, vector<8x96xf32> -> vector<8x96xf32>
    %179 = vector.extract_strided_slice %176 {offsets = [0, 0], sizes = [8, 32], strides = [1, 1]} : vector<8x96xf32> to vector<8x32xf32>
    %180 = vector.extract_strided_slice %178 {offsets = [0, 0], sizes = [8, 32], strides = [1, 1]} : vector<8x96xf32> to vector<8x32xf32>
    %181 = arith.addf %179, %180 : vector<8x32xf32>
    %182 = arith.negf %181 : vector<8x32xf32>
    %183 = math.exp %182 : vector<8x32xf32>
    %cst_48 = arith.constant 1.000000e+00 : f32
    %184 = vector.broadcast %cst_48 : f32 to vector<8x32xf32>
    %185 = arith.addf %184, %183 : vector<8x32xf32>
    %186 = arith.divf %184, %185 : vector<8x32xf32>
    %187 = vector.extract_strided_slice %176 {offsets = [0, 32], sizes = [8, 32], strides = [1, 1]} : vector<8x96xf32> to vector<8x32xf32>
    %188 = vector.extract_strided_slice %178 {offsets = [0, 32], sizes = [8, 32], strides = [1, 1]} : vector<8x96xf32> to vector<8x32xf32>
    %189 = arith.addf %187, %188 : vector<8x32xf32>
    %190 = arith.negf %189 : vector<8x32xf32>
    %191 = math.exp %190 : vector<8x32xf32>
    %cst_49 = arith.constant 1.000000e+00 : f32
    %192 = vector.broadcast %cst_49 : f32 to vector<8x32xf32>
    %193 = arith.addf %192, %191 : vector<8x32xf32>
    %194 = arith.divf %192, %193 : vector<8x32xf32>
    %195 = vector.extract_strided_slice %176 {offsets = [0, 64], sizes = [8, 32], strides = [1, 1]} : vector<8x96xf32> to vector<8x32xf32>
    %196 = vector.extract_strided_slice %178 {offsets = [0, 64], sizes = [8, 32], strides = [1, 1]} : vector<8x96xf32> to vector<8x32xf32>
    %197 = arith.mulf %186, %196 : vector<8x32xf32>
    %198 = arith.addf %195, %197 : vector<8x32xf32>
    %199 = math.tanh %198 : vector<8x32xf32>
    %cst_50 = arith.constant 1.000000e+00 : f32
    %200 = vector.broadcast %cst_50 : f32 to vector<8x32xf32>
    %201 = arith.subf %200, %194 : vector<8x32xf32>
    %202 = arith.mulf %201, %199 : vector<8x32xf32>
    %203 = arith.mulf %194, %149 : vector<8x32xf32>
    %204 = arith.addf %202, %203 : vector<8x32xf32>
    %205 = tpu.concatenate %204, %175 in 1 : vector<8x32xf32>, vector<8x32xf32> -> vector<8x64xf32>
    %c0_51 = arith.constant 0 : index
    %c0_52 = arith.constant 0 : index
    %206 = vector.load %arg6[%c0_51, %c0_52] : memref<64x128xf32, #tpu.memory_space<vmem>>, vector<64x128xf32>
    %cst_53 = arith.constant dense<0.000000e+00> : vector<8x128xf32>
    %207 = tpu.matmul %205, %206, %cst_53 {dimension_numbers = #tpu.dot_dimension_numbers<[1], [0], [0], [1], [0, 0, 1, 1], [], []>} : vector<8x64xf32>, vector<64x128xf32>, vector<8x128xf32> -> vector<8x128xf32>
    %208 = arith.addf %207, %8 : vector<8x128xf32>
    %209 = vector.extract_strided_slice %208 {offsets = [0, 0], sizes = [8, 32], strides = [1, 1]} : vector<8x128xf32> to vector<8x32xf32>
    %210 = arith.negf %209 : vector<8x32xf32>
    %211 = math.exp %210 : vector<8x32xf32>
    %cst_54 = arith.constant 1.000000e+00 : f32
    %212 = vector.broadcast %cst_54 : f32 to vector<8x32xf32>
    %213 = arith.addf %212, %211 : vector<8x32xf32>
    %214 = arith.divf %212, %213 : vector<8x32xf32>
    %215 = vector.extract_strided_slice %208 {offsets = [0, 32], sizes = [8, 32], strides = [1, 1]} : vector<8x128xf32> to vector<8x32xf32>
    %216 = arith.negf %215 : vector<8x32xf32>
    %217 = math.exp %216 : vector<8x32xf32>
    %cst_55 = arith.constant 1.000000e+00 : f32
    %218 = vector.broadcast %cst_55 : f32 to vector<8x32xf32>
    %219 = arith.addf %218, %217 : vector<8x32xf32>
    %220 = arith.divf %218, %219 : vector<8x32xf32>
    %221 = vector.extract_strided_slice %208 {offsets = [0, 64], sizes = [8, 32], strides = [1, 1]} : vector<8x128xf32> to vector<8x32xf32>
    %222 = vector.extract_strided_slice %208 {offsets = [0, 96], sizes = [8, 32], strides = [1, 1]} : vector<8x128xf32> to vector<8x32xf32>
    %223 = arith.mulf %214, %222 : vector<8x32xf32>
    %224 = arith.addf %221, %223 : vector<8x32xf32>
    %225 = math.tanh %224 : vector<8x32xf32>
    %cst_56 = arith.constant 1.000000e+00 : f32
    %226 = vector.broadcast %cst_56 : f32 to vector<8x32xf32>
    %227 = arith.subf %226, %220 : vector<8x32xf32>
    %228 = arith.mulf %227, %225 : vector<8x32xf32>
    %229 = arith.mulf %220, %175 : vector<8x32xf32>
    %230 = arith.addf %228, %229 : vector<8x32xf32>
    %231 = vector.extract_strided_slice %5 {offsets = [32, 0], sizes = [8, 96], strides = [1, 1]} : vector<64x96xf32> to vector<8x96xf32>
    %c0_57 = arith.constant 0 : index
    %c0_58 = arith.constant 0 : index
    %232 = vector.load %arg2[%c0_57, %c0_58] : memref<32x96xf32, #tpu.memory_space<vmem>>, vector<32x96xf32>
    %cst_59 = arith.constant dense<0.000000e+00> : vector<8x96xf32>
    %233 = tpu.matmul %204, %232, %cst_59 {dimension_numbers = #tpu.dot_dimension_numbers<[1], [0], [0], [1], [0, 0, 1, 1], [], []>} : vector<8x32xf32>, vector<32x96xf32>, vector<8x96xf32> -> vector<8x96xf32>
    %234 = vector.extract_strided_slice %231 {offsets = [0, 0], sizes = [8, 32], strides = [1, 1]} : vector<8x96xf32> to vector<8x32xf32>
    %235 = vector.extract_strided_slice %233 {offsets = [0, 0], sizes = [8, 32], strides = [1, 1]} : vector<8x96xf32> to vector<8x32xf32>
    %236 = arith.addf %234, %235 : vector<8x32xf32>
    %237 = arith.negf %236 : vector<8x32xf32>
    %238 = math.exp %237 : vector<8x32xf32>
    %cst_60 = arith.constant 1.000000e+00 : f32
    %239 = vector.broadcast %cst_60 : f32 to vector<8x32xf32>
    %240 = arith.addf %239, %238 : vector<8x32xf32>
    %241 = arith.divf %239, %240 : vector<8x32xf32>
    %242 = vector.extract_strided_slice %231 {offsets = [0, 32], sizes = [8, 32], strides = [1, 1]} : vector<8x96xf32> to vector<8x32xf32>
    %243 = vector.extract_strided_slice %233 {offsets = [0, 32], sizes = [8, 32], strides = [1, 1]} : vector<8x96xf32> to vector<8x32xf32>
    %244 = arith.addf %242, %243 : vector<8x32xf32>
    %245 = arith.negf %244 : vector<8x32xf32>
    %246 = math.exp %245 : vector<8x32xf32>
    %cst_61 = arith.constant 1.000000e+00 : f32
    %247 = vector.broadcast %cst_61 : f32 to vector<8x32xf32>
    %248 = arith.addf %247, %246 : vector<8x32xf32>
    %249 = arith.divf %247, %248 : vector<8x32xf32>
    %250 = vector.extract_strided_slice %231 {offsets = [0, 64], sizes = [8, 32], strides = [1, 1]} : vector<8x96xf32> to vector<8x32xf32>
    %251 = vector.extract_strided_slice %233 {offsets = [0, 64], sizes = [8, 32], strides = [1, 1]} : vector<8x96xf32> to vector<8x32xf32>
    %252 = arith.mulf %241, %251 : vector<8x32xf32>
    %253 = arith.addf %250, %252 : vector<8x32xf32>
    %254 = math.tanh %253 : vector<8x32xf32>
    %cst_62 = arith.constant 1.000000e+00 : f32
    %255 = vector.broadcast %cst_62 : f32 to vector<8x32xf32>
    %256 = arith.subf %255, %249 : vector<8x32xf32>
    %257 = arith.mulf %256, %254 : vector<8x32xf32>
    %258 = arith.mulf %249, %204 : vector<8x32xf32>
    %259 = arith.addf %257, %258 : vector<8x32xf32>
    %260 = tpu.concatenate %259, %230 in 1 : vector<8x32xf32>, vector<8x32xf32> -> vector<8x64xf32>
    %c0_63 = arith.constant 0 : index
    %c0_64 = arith.constant 0 : index
    %261 = vector.load %arg6[%c0_63, %c0_64] : memref<64x128xf32, #tpu.memory_space<vmem>>, vector<64x128xf32>
    %cst_65 = arith.constant dense<0.000000e+00> : vector<8x128xf32>
    %262 = tpu.matmul %260, %261, %cst_65 {dimension_numbers = #tpu.dot_dimension_numbers<[1], [0], [0], [1], [0, 0, 1, 1], [], []>} : vector<8x64xf32>, vector<64x128xf32>, vector<8x128xf32> -> vector<8x128xf32>
    %263 = arith.addf %262, %8 : vector<8x128xf32>
    %264 = vector.extract_strided_slice %263 {offsets = [0, 0], sizes = [8, 32], strides = [1, 1]} : vector<8x128xf32> to vector<8x32xf32>
    %265 = arith.negf %264 : vector<8x32xf32>
    %266 = math.exp %265 : vector<8x32xf32>
    %cst_66 = arith.constant 1.000000e+00 : f32
    %267 = vector.broadcast %cst_66 : f32 to vector<8x32xf32>
    %268 = arith.addf %267, %266 : vector<8x32xf32>
    %269 = arith.divf %267, %268 : vector<8x32xf32>
    %270 = vector.extract_strided_slice %263 {offsets = [0, 32], sizes = [8, 32], strides = [1, 1]} : vector<8x128xf32> to vector<8x32xf32>
    %271 = arith.negf %270 : vector<8x32xf32>
    %272 = math.exp %271 : vector<8x32xf32>
    %cst_67 = arith.constant 1.000000e+00 : f32
    %273 = vector.broadcast %cst_67 : f32 to vector<8x32xf32>
    %274 = arith.addf %273, %272 : vector<8x32xf32>
    %275 = arith.divf %273, %274 : vector<8x32xf32>
    %276 = vector.extract_strided_slice %263 {offsets = [0, 64], sizes = [8, 32], strides = [1, 1]} : vector<8x128xf32> to vector<8x32xf32>
    %277 = vector.extract_strided_slice %263 {offsets = [0, 96], sizes = [8, 32], strides = [1, 1]} : vector<8x128xf32> to vector<8x32xf32>
    %278 = arith.mulf %269, %277 : vector<8x32xf32>
    %279 = arith.addf %276, %278 : vector<8x32xf32>
    %280 = math.tanh %279 : vector<8x32xf32>
    %cst_68 = arith.constant 1.000000e+00 : f32
    %281 = vector.broadcast %cst_68 : f32 to vector<8x32xf32>
    %282 = arith.subf %281, %275 : vector<8x32xf32>
    %283 = arith.mulf %282, %280 : vector<8x32xf32>
    %284 = arith.mulf %275, %230 : vector<8x32xf32>
    %285 = arith.addf %283, %284 : vector<8x32xf32>
    %286 = vector.extract_strided_slice %5 {offsets = [40, 0], sizes = [8, 96], strides = [1, 1]} : vector<64x96xf32> to vector<8x96xf32>
    %c0_69 = arith.constant 0 : index
    %c0_70 = arith.constant 0 : index
    %287 = vector.load %arg2[%c0_69, %c0_70] : memref<32x96xf32, #tpu.memory_space<vmem>>, vector<32x96xf32>
    %cst_71 = arith.constant dense<0.000000e+00> : vector<8x96xf32>
    %288 = tpu.matmul %259, %287, %cst_71 {dimension_numbers = #tpu.dot_dimension_numbers<[1], [0], [0], [1], [0, 0, 1, 1], [], []>} : vector<8x32xf32>, vector<32x96xf32>, vector<8x96xf32> -> vector<8x96xf32>
    %289 = vector.extract_strided_slice %286 {offsets = [0, 0], sizes = [8, 32], strides = [1, 1]} : vector<8x96xf32> to vector<8x32xf32>
    %290 = vector.extract_strided_slice %288 {offsets = [0, 0], sizes = [8, 32], strides = [1, 1]} : vector<8x96xf32> to vector<8x32xf32>
    %291 = arith.addf %289, %290 : vector<8x32xf32>
    %292 = arith.negf %291 : vector<8x32xf32>
    %293 = math.exp %292 : vector<8x32xf32>
    %cst_72 = arith.constant 1.000000e+00 : f32
    %294 = vector.broadcast %cst_72 : f32 to vector<8x32xf32>
    %295 = arith.addf %294, %293 : vector<8x32xf32>
    %296 = arith.divf %294, %295 : vector<8x32xf32>
    %297 = vector.extract_strided_slice %286 {offsets = [0, 32], sizes = [8, 32], strides = [1, 1]} : vector<8x96xf32> to vector<8x32xf32>
    %298 = vector.extract_strided_slice %288 {offsets = [0, 32], sizes = [8, 32], strides = [1, 1]} : vector<8x96xf32> to vector<8x32xf32>
    %299 = arith.addf %297, %298 : vector<8x32xf32>
    %300 = arith.negf %299 : vector<8x32xf32>
    %301 = math.exp %300 : vector<8x32xf32>
    %cst_73 = arith.constant 1.000000e+00 : f32
    %302 = vector.broadcast %cst_73 : f32 to vector<8x32xf32>
    %303 = arith.addf %302, %301 : vector<8x32xf32>
    %304 = arith.divf %302, %303 : vector<8x32xf32>
    %305 = vector.extract_strided_slice %286 {offsets = [0, 64], sizes = [8, 32], strides = [1, 1]} : vector<8x96xf32> to vector<8x32xf32>
    %306 = vector.extract_strided_slice %288 {offsets = [0, 64], sizes = [8, 32], strides = [1, 1]} : vector<8x96xf32> to vector<8x32xf32>
    %307 = arith.mulf %296, %306 : vector<8x32xf32>
    %308 = arith.addf %305, %307 : vector<8x32xf32>
    %309 = math.tanh %308 : vector<8x32xf32>
    %cst_74 = arith.constant 1.000000e+00 : f32
    %310 = vector.broadcast %cst_74 : f32 to vector<8x32xf32>
    %311 = arith.subf %310, %304 : vector<8x32xf32>
    %312 = arith.mulf %311, %309 : vector<8x32xf32>
    %313 = arith.mulf %304, %259 : vector<8x32xf32>
    %314 = arith.addf %312, %313 : vector<8x32xf32>
    %315 = tpu.concatenate %314, %285 in 1 : vector<8x32xf32>, vector<8x32xf32> -> vector<8x64xf32>
    %c0_75 = arith.constant 0 : index
    %c0_76 = arith.constant 0 : index
    %316 = vector.load %arg6[%c0_75, %c0_76] : memref<64x128xf32, #tpu.memory_space<vmem>>, vector<64x128xf32>
    %cst_77 = arith.constant dense<0.000000e+00> : vector<8x128xf32>
    %317 = tpu.matmul %315, %316, %cst_77 {dimension_numbers = #tpu.dot_dimension_numbers<[1], [0], [0], [1], [0, 0, 1, 1], [], []>} : vector<8x64xf32>, vector<64x128xf32>, vector<8x128xf32> -> vector<8x128xf32>
    %318 = arith.addf %317, %8 : vector<8x128xf32>
    %319 = vector.extract_strided_slice %318 {offsets = [0, 0], sizes = [8, 32], strides = [1, 1]} : vector<8x128xf32> to vector<8x32xf32>
    %320 = arith.negf %319 : vector<8x32xf32>
    %321 = math.exp %320 : vector<8x32xf32>
    %cst_78 = arith.constant 1.000000e+00 : f32
    %322 = vector.broadcast %cst_78 : f32 to vector<8x32xf32>
    %323 = arith.addf %322, %321 : vector<8x32xf32>
    %324 = arith.divf %322, %323 : vector<8x32xf32>
    %325 = vector.extract_strided_slice %318 {offsets = [0, 32], sizes = [8, 32], strides = [1, 1]} : vector<8x128xf32> to vector<8x32xf32>
    %326 = arith.negf %325 : vector<8x32xf32>
    %327 = math.exp %326 : vector<8x32xf32>
    %cst_79 = arith.constant 1.000000e+00 : f32
    %328 = vector.broadcast %cst_79 : f32 to vector<8x32xf32>
    %329 = arith.addf %328, %327 : vector<8x32xf32>
    %330 = arith.divf %328, %329 : vector<8x32xf32>
    %331 = vector.extract_strided_slice %318 {offsets = [0, 64], sizes = [8, 32], strides = [1, 1]} : vector<8x128xf32> to vector<8x32xf32>
    %332 = vector.extract_strided_slice %318 {offsets = [0, 96], sizes = [8, 32], strides = [1, 1]} : vector<8x128xf32> to vector<8x32xf32>
    %333 = arith.mulf %324, %332 : vector<8x32xf32>
    %334 = arith.addf %331, %333 : vector<8x32xf32>
    %335 = math.tanh %334 : vector<8x32xf32>
    %cst_80 = arith.constant 1.000000e+00 : f32
    %336 = vector.broadcast %cst_80 : f32 to vector<8x32xf32>
    %337 = arith.subf %336, %330 : vector<8x32xf32>
    %338 = arith.mulf %337, %335 : vector<8x32xf32>
    %339 = arith.mulf %330, %285 : vector<8x32xf32>
    %340 = arith.addf %338, %339 : vector<8x32xf32>
    %341 = vector.extract_strided_slice %5 {offsets = [48, 0], sizes = [8, 96], strides = [1, 1]} : vector<64x96xf32> to vector<8x96xf32>
    %c0_81 = arith.constant 0 : index
    %c0_82 = arith.constant 0 : index
    %342 = vector.load %arg2[%c0_81, %c0_82] : memref<32x96xf32, #tpu.memory_space<vmem>>, vector<32x96xf32>
    %cst_83 = arith.constant dense<0.000000e+00> : vector<8x96xf32>
    %343 = tpu.matmul %314, %342, %cst_83 {dimension_numbers = #tpu.dot_dimension_numbers<[1], [0], [0], [1], [0, 0, 1, 1], [], []>} : vector<8x32xf32>, vector<32x96xf32>, vector<8x96xf32> -> vector<8x96xf32>
    %344 = vector.extract_strided_slice %341 {offsets = [0, 0], sizes = [8, 32], strides = [1, 1]} : vector<8x96xf32> to vector<8x32xf32>
    %345 = vector.extract_strided_slice %343 {offsets = [0, 0], sizes = [8, 32], strides = [1, 1]} : vector<8x96xf32> to vector<8x32xf32>
    %346 = arith.addf %344, %345 : vector<8x32xf32>
    %347 = arith.negf %346 : vector<8x32xf32>
    %348 = math.exp %347 : vector<8x32xf32>
    %cst_84 = arith.constant 1.000000e+00 : f32
    %349 = vector.broadcast %cst_84 : f32 to vector<8x32xf32>
    %350 = arith.addf %349, %348 : vector<8x32xf32>
    %351 = arith.divf %349, %350 : vector<8x32xf32>
    %352 = vector.extract_strided_slice %341 {offsets = [0, 32], sizes = [8, 32], strides = [1, 1]} : vector<8x96xf32> to vector<8x32xf32>
    %353 = vector.extract_strided_slice %343 {offsets = [0, 32], sizes = [8, 32], strides = [1, 1]} : vector<8x96xf32> to vector<8x32xf32>
    %354 = arith.addf %352, %353 : vector<8x32xf32>
    %355 = arith.negf %354 : vector<8x32xf32>
    %356 = math.exp %355 : vector<8x32xf32>
    %cst_85 = arith.constant 1.000000e+00 : f32
    %357 = vector.broadcast %cst_85 : f32 to vector<8x32xf32>
    %358 = arith.addf %357, %356 : vector<8x32xf32>
    %359 = arith.divf %357, %358 : vector<8x32xf32>
    %360 = vector.extract_strided_slice %341 {offsets = [0, 64], sizes = [8, 32], strides = [1, 1]} : vector<8x96xf32> to vector<8x32xf32>
    %361 = vector.extract_strided_slice %343 {offsets = [0, 64], sizes = [8, 32], strides = [1, 1]} : vector<8x96xf32> to vector<8x32xf32>
    %362 = arith.mulf %351, %361 : vector<8x32xf32>
    %363 = arith.addf %360, %362 : vector<8x32xf32>
    %364 = math.tanh %363 : vector<8x32xf32>
    %cst_86 = arith.constant 1.000000e+00 : f32
    %365 = vector.broadcast %cst_86 : f32 to vector<8x32xf32>
    %366 = arith.subf %365, %359 : vector<8x32xf32>
    %367 = arith.mulf %366, %364 : vector<8x32xf32>
    %368 = arith.mulf %359, %314 : vector<8x32xf32>
    %369 = arith.addf %367, %368 : vector<8x32xf32>
    %370 = tpu.concatenate %369, %340 in 1 : vector<8x32xf32>, vector<8x32xf32> -> vector<8x64xf32>
    %c0_87 = arith.constant 0 : index
    %c0_88 = arith.constant 0 : index
    %371 = vector.load %arg6[%c0_87, %c0_88] : memref<64x128xf32, #tpu.memory_space<vmem>>, vector<64x128xf32>
    %cst_89 = arith.constant dense<0.000000e+00> : vector<8x128xf32>
    %372 = tpu.matmul %370, %371, %cst_89 {dimension_numbers = #tpu.dot_dimension_numbers<[1], [0], [0], [1], [0, 0, 1, 1], [], []>} : vector<8x64xf32>, vector<64x128xf32>, vector<8x128xf32> -> vector<8x128xf32>
    %373 = arith.addf %372, %8 : vector<8x128xf32>
    %374 = vector.extract_strided_slice %373 {offsets = [0, 0], sizes = [8, 32], strides = [1, 1]} : vector<8x128xf32> to vector<8x32xf32>
    %375 = arith.negf %374 : vector<8x32xf32>
    %376 = math.exp %375 : vector<8x32xf32>
    %cst_90 = arith.constant 1.000000e+00 : f32
    %377 = vector.broadcast %cst_90 : f32 to vector<8x32xf32>
    %378 = arith.addf %377, %376 : vector<8x32xf32>
    %379 = arith.divf %377, %378 : vector<8x32xf32>
    %380 = vector.extract_strided_slice %373 {offsets = [0, 32], sizes = [8, 32], strides = [1, 1]} : vector<8x128xf32> to vector<8x32xf32>
    %381 = arith.negf %380 : vector<8x32xf32>
    %382 = math.exp %381 : vector<8x32xf32>
    %cst_91 = arith.constant 1.000000e+00 : f32
    %383 = vector.broadcast %cst_91 : f32 to vector<8x32xf32>
    %384 = arith.addf %383, %382 : vector<8x32xf32>
    %385 = arith.divf %383, %384 : vector<8x32xf32>
    %386 = vector.extract_strided_slice %373 {offsets = [0, 64], sizes = [8, 32], strides = [1, 1]} : vector<8x128xf32> to vector<8x32xf32>
    %387 = vector.extract_strided_slice %373 {offsets = [0, 96], sizes = [8, 32], strides = [1, 1]} : vector<8x128xf32> to vector<8x32xf32>
    %388 = arith.mulf %379, %387 : vector<8x32xf32>
    %389 = arith.addf %386, %388 : vector<8x32xf32>
    %390 = math.tanh %389 : vector<8x32xf32>
    %cst_92 = arith.constant 1.000000e+00 : f32
    %391 = vector.broadcast %cst_92 : f32 to vector<8x32xf32>
    %392 = arith.subf %391, %385 : vector<8x32xf32>
    %393 = arith.mulf %392, %390 : vector<8x32xf32>
    %394 = arith.mulf %385, %340 : vector<8x32xf32>
    %395 = arith.addf %393, %394 : vector<8x32xf32>
    %396 = vector.extract_strided_slice %5 {offsets = [56, 0], sizes = [8, 96], strides = [1, 1]} : vector<64x96xf32> to vector<8x96xf32>
    %c0_93 = arith.constant 0 : index
    %c0_94 = arith.constant 0 : index
    %397 = vector.load %arg2[%c0_93, %c0_94] : memref<32x96xf32, #tpu.memory_space<vmem>>, vector<32x96xf32>
    %cst_95 = arith.constant dense<0.000000e+00> : vector<8x96xf32>
    %398 = tpu.matmul %369, %397, %cst_95 {dimension_numbers = #tpu.dot_dimension_numbers<[1], [0], [0], [1], [0, 0, 1, 1], [], []>} : vector<8x32xf32>, vector<32x96xf32>, vector<8x96xf32> -> vector<8x96xf32>
    %399 = vector.extract_strided_slice %396 {offsets = [0, 0], sizes = [8, 32], strides = [1, 1]} : vector<8x96xf32> to vector<8x32xf32>
    %400 = vector.extract_strided_slice %398 {offsets = [0, 0], sizes = [8, 32], strides = [1, 1]} : vector<8x96xf32> to vector<8x32xf32>
    %401 = arith.addf %399, %400 : vector<8x32xf32>
    %402 = arith.negf %401 : vector<8x32xf32>
    %403 = math.exp %402 : vector<8x32xf32>
    %cst_96 = arith.constant 1.000000e+00 : f32
    %404 = vector.broadcast %cst_96 : f32 to vector<8x32xf32>
    %405 = arith.addf %404, %403 : vector<8x32xf32>
    %406 = arith.divf %404, %405 : vector<8x32xf32>
    %407 = vector.extract_strided_slice %396 {offsets = [0, 32], sizes = [8, 32], strides = [1, 1]} : vector<8x96xf32> to vector<8x32xf32>
    %408 = vector.extract_strided_slice %398 {offsets = [0, 32], sizes = [8, 32], strides = [1, 1]} : vector<8x96xf32> to vector<8x32xf32>
    %409 = arith.addf %407, %408 : vector<8x32xf32>
    %410 = arith.negf %409 : vector<8x32xf32>
    %411 = math.exp %410 : vector<8x32xf32>
    %cst_97 = arith.constant 1.000000e+00 : f32
    %412 = vector.broadcast %cst_97 : f32 to vector<8x32xf32>
    %413 = arith.addf %412, %411 : vector<8x32xf32>
    %414 = arith.divf %412, %413 : vector<8x32xf32>
    %415 = vector.extract_strided_slice %396 {offsets = [0, 64], sizes = [8, 32], strides = [1, 1]} : vector<8x96xf32> to vector<8x32xf32>
    %416 = vector.extract_strided_slice %398 {offsets = [0, 64], sizes = [8, 32], strides = [1, 1]} : vector<8x96xf32> to vector<8x32xf32>
    %417 = arith.mulf %406, %416 : vector<8x32xf32>
    %418 = arith.addf %415, %417 : vector<8x32xf32>
    %419 = math.tanh %418 : vector<8x32xf32>
    %cst_98 = arith.constant 1.000000e+00 : f32
    %420 = vector.broadcast %cst_98 : f32 to vector<8x32xf32>
    %421 = arith.subf %420, %414 : vector<8x32xf32>
    %422 = arith.mulf %421, %419 : vector<8x32xf32>
    %423 = arith.mulf %414, %369 : vector<8x32xf32>
    %424 = arith.addf %422, %423 : vector<8x32xf32>
    %425 = tpu.concatenate %424, %395 in 1 : vector<8x32xf32>, vector<8x32xf32> -> vector<8x64xf32>
    %c0_99 = arith.constant 0 : index
    %c0_100 = arith.constant 0 : index
    %426 = vector.load %arg6[%c0_99, %c0_100] : memref<64x128xf32, #tpu.memory_space<vmem>>, vector<64x128xf32>
    %cst_101 = arith.constant dense<0.000000e+00> : vector<8x128xf32>
    %427 = tpu.matmul %425, %426, %cst_101 {dimension_numbers = #tpu.dot_dimension_numbers<[1], [0], [0], [1], [0, 0, 1, 1], [], []>} : vector<8x64xf32>, vector<64x128xf32>, vector<8x128xf32> -> vector<8x128xf32>
    %428 = arith.addf %427, %8 : vector<8x128xf32>
    %429 = vector.extract_strided_slice %428 {offsets = [0, 0], sizes = [8, 32], strides = [1, 1]} : vector<8x128xf32> to vector<8x32xf32>
    %430 = arith.negf %429 : vector<8x32xf32>
    %431 = math.exp %430 : vector<8x32xf32>
    %cst_102 = arith.constant 1.000000e+00 : f32
    %432 = vector.broadcast %cst_102 : f32 to vector<8x32xf32>
    %433 = arith.addf %432, %431 : vector<8x32xf32>
    %434 = arith.divf %432, %433 : vector<8x32xf32>
    %435 = vector.extract_strided_slice %428 {offsets = [0, 32], sizes = [8, 32], strides = [1, 1]} : vector<8x128xf32> to vector<8x32xf32>
    %436 = arith.negf %435 : vector<8x32xf32>
    %437 = math.exp %436 : vector<8x32xf32>
    %cst_103 = arith.constant 1.000000e+00 : f32
    %438 = vector.broadcast %cst_103 : f32 to vector<8x32xf32>
    %439 = arith.addf %438, %437 : vector<8x32xf32>
    %440 = arith.divf %438, %439 : vector<8x32xf32>
    %441 = vector.extract_strided_slice %428 {offsets = [0, 64], sizes = [8, 32], strides = [1, 1]} : vector<8x128xf32> to vector<8x32xf32>
    %442 = vector.extract_strided_slice %428 {offsets = [0, 96], sizes = [8, 32], strides = [1, 1]} : vector<8x128xf32> to vector<8x32xf32>
    %443 = arith.mulf %434, %442 : vector<8x32xf32>
    %444 = arith.addf %441, %443 : vector<8x32xf32>
    %445 = math.tanh %444 : vector<8x32xf32>
    %cst_104 = arith.constant 1.000000e+00 : f32
    %446 = vector.broadcast %cst_104 : f32 to vector<8x32xf32>
    %447 = arith.subf %446, %440 : vector<8x32xf32>
    %448 = arith.mulf %447, %445 : vector<8x32xf32>
    %449 = arith.mulf %440, %395 : vector<8x32xf32>
    %450 = arith.addf %448, %449 : vector<8x32xf32>
    %c56 = arith.constant 56 : index
    %c0_105 = arith.constant 0 : index
    %451 = vector.load %arg0[%c56, %c0_105] : memref<64x16xf32, #tpu.memory_space<vmem>>, vector<8x16xf32>
    %c0_106 = arith.constant 0 : index
    %c0_107 = arith.constant 0 : index
    %452 = vector.load %arg4[%c0_106, %c0_107] : memref<16x64xf32, #tpu.memory_space<vmem>>, vector<16x64xf32>
    %cst_108 = arith.constant dense<0.000000e+00> : vector<8x64xf32>
    %453 = tpu.matmul %451, %452, %cst_108 {dimension_numbers = #tpu.dot_dimension_numbers<[1], [0], [0], [1], [0, 0, 1, 1], [], []>} : vector<8x16xf32>, vector<16x64xf32>, vector<8x64xf32> -> vector<8x64xf32>
    %c0_109 = arith.constant 0 : index
    %c0_110 = arith.constant 0 : index
    %454 = vector.load %arg5[%c0_109, %c0_110] : memref<1x64xf32, #tpu.memory_space<vmem>>, vector<1x64xf32>
    %455 = vector.broadcast %454 : vector<1x64xf32> to vector<8x64xf32>
    %456 = arith.addf %453, %455 : vector<8x64xf32>
    %457 = vector.extract_strided_slice %456 {offsets = [0, 0], sizes = [8, 32], strides = [1, 1]} : vector<8x64xf32> to vector<8x32xf32>
    %458 = arith.negf %457 : vector<8x32xf32>
    %459 = math.exp %458 : vector<8x32xf32>
    %cst_111 = arith.constant 1.000000e+00 : f32
    %460 = vector.broadcast %cst_111 : f32 to vector<8x32xf32>
    %461 = arith.addf %460, %459 : vector<8x32xf32>
    %462 = arith.divf %460, %461 : vector<8x32xf32>
    %463 = vector.extract_strided_slice %456 {offsets = [0, 32], sizes = [8, 32], strides = [1, 1]} : vector<8x64xf32> to vector<8x32xf32>
    %464 = math.tanh %463 : vector<8x32xf32>
    %cst_112 = arith.constant 1.000000e+00 : f32
    %465 = vector.broadcast %cst_112 : f32 to vector<8x32xf32>
    %466 = arith.subf %465, %462 : vector<8x32xf32>
    %467 = arith.mulf %466, %464 : vector<8x32xf32>
    %c0_113 = arith.constant 0 : index
    %c0_114 = arith.constant 0 : index
    %468 = vector.load %arg8[%c0_113, %c0_114] : memref<32x64xf32, #tpu.memory_space<vmem>>, vector<32x64xf32>
    %cst_115 = arith.constant dense<0.000000e+00> : vector<8x64xf32>
    %469 = tpu.matmul %467, %468, %cst_115 {dimension_numbers = #tpu.dot_dimension_numbers<[1], [0], [0], [1], [0, 0, 1, 1], [], []>} : vector<8x32xf32>, vector<32x64xf32>, vector<8x64xf32> -> vector<8x64xf32>
    %c0_116 = arith.constant 0 : index
    %c0_117 = arith.constant 0 : index
    %470 = vector.load %arg9[%c0_116, %c0_117] : memref<1x64xf32, #tpu.memory_space<vmem>>, vector<1x64xf32>
    %471 = vector.broadcast %470 : vector<1x64xf32> to vector<8x64xf32>
    %472 = arith.addf %469, %471 : vector<8x64xf32>
    %473 = vector.extract_strided_slice %472 {offsets = [0, 0], sizes = [8, 32], strides = [1, 1]} : vector<8x64xf32> to vector<8x32xf32>
    %474 = arith.negf %473 : vector<8x32xf32>
    %475 = math.exp %474 : vector<8x32xf32>
    %cst_118 = arith.constant 1.000000e+00 : f32
    %476 = vector.broadcast %cst_118 : f32 to vector<8x32xf32>
    %477 = arith.addf %476, %475 : vector<8x32xf32>
    %478 = arith.divf %476, %477 : vector<8x32xf32>
    %479 = vector.extract_strided_slice %472 {offsets = [0, 32], sizes = [8, 32], strides = [1, 1]} : vector<8x64xf32> to vector<8x32xf32>
    %480 = math.tanh %479 : vector<8x32xf32>
    %cst_119 = arith.constant 1.000000e+00 : f32
    %481 = vector.broadcast %cst_119 : f32 to vector<8x32xf32>
    %482 = arith.subf %481, %478 : vector<8x32xf32>
    %483 = arith.mulf %482, %480 : vector<8x32xf32>
    %484 = tpu.concatenate %450, %483 in 1 : vector<8x32xf32>, vector<8x32xf32> -> vector<8x64xf32>
    %c0_120 = arith.constant 0 : index
    %c0_121 = arith.constant 0 : index
    %485 = vector.load %arg10[%c0_120, %c0_121] : memref<64x32xf32, #tpu.memory_space<vmem>>, vector<64x32xf32>
    %cst_122 = arith.constant dense<0.000000e+00> : vector<8x32xf32>
    %486 = tpu.matmul %484, %485, %cst_122 {dimension_numbers = #tpu.dot_dimension_numbers<[1], [0], [0], [1], [0, 0, 1, 1], [], []>} : vector<8x64xf32>, vector<64x32xf32>, vector<8x32xf32> -> vector<8x32xf32>
    %c0_123 = arith.constant 0 : index
    %c0_124 = arith.constant 0 : index
    %487 = vector.load %arg11[%c0_123, %c0_124] : memref<1x32xf32, #tpu.memory_space<vmem>>, vector<1x32xf32>
    %488 = vector.broadcast %487 : vector<1x32xf32> to vector<8x32xf32>
    %489 = arith.addf %486, %488 : vector<8x32xf32>
    %c0_125 = arith.constant 0 : index
    %c0_126 = arith.constant 0 : index
    %490 = vector.load %arg12[%c0_125, %c0_126] : memref<8x32xf32, #tpu.memory_space<vmem>>, vector<8x32xf32>
    tpu.vector_store %arg12[%c0_125, %c0_126], %489 {strides = array<i32>} : memref<8x32xf32, #tpu.memory_space<vmem>>, vector<8x32xf32>,
    return
  }
}

</mosaic_0001>

<bundles_post_ra>
// kernel: tpu_custom_call.1
= control target key start
LH: loop header
LB: loop body
LE: loop exit
PB: predicated region body
PF: predicated region fallthrough
CT: control target
= control target key end

     0   :  { %17 = vsyncpa [#allocation3], 0  ;;  %s3506_s0 = inlined_call_operand.vmem [shape: f32[64,16], index: 0, kind: input, shape index: {}]   ;;  %s3507_s1 = inlined_call_operand.vmem [shape: f32[16,96], index: 1, kind: input, shape index: {}]   ;;  %s3508_s2 = inlined_call_operand.vmem [shape: f32[32,96], index: 2, kind: input, shape index: {}]   ;;  %s3509_s3 = inlined_call_operand.vmem [shape: f32[1,96], index: 3, kind: input, shape index: {}]   ;;  %s3510_s4 = inlined_call_operand.hbm [shape: f32[16,64], index: 4, kind: input, shape index: {}]   ;;  %s3511_s5 = inlined_call_operand.vmem [shape: f32[1,64], index: 5, kind: input, shape index: {}]   ;;  %s3512_s6 = inlined_call_operand.vmem [shape: f32[64,128], index: 6, kind: input, shape index: {}]   ;;  %s3513_s7 = inlined_call_operand.vmem [shape: f32[1,128], index: 7, kind: input, shape index: {}]   ;;  %s3514_s8 = inlined_call_operand.vmem [shape: f32[32,64], index: 8, kind: input, shape index: {}]   ;;  %s3515_s9 = inlined_call_operand.vmem [shape: f32[1,64], index: 9, kind: input, shape index: {}]   ;;  %s3516_s10 = inlined_call_operand.vmem [shape: f32[64,32], index: 10, kind: input, shape index: {}]   ;;  %s3517_s11 = inlined_call_operand.vmem [shape: f32[1,32], index: 11, kind: input, shape index: {}]   ;;  %s3518_s12 = inlined_call_operand.hbm [shape: f32[8,32], index: 12, kind: output, shape index: {}]  }
   0x1   :  { %18 = vsyncpa [#allocation4], 0  ;;  %s2951_s21 = smov [#allocation2]   ;;  %s2903_s25 = scalar_lea.hbm %s3510_s4, 256 }
   0x2   :  { %s32_s22 = sshll.u32 %s2951_s21, 4  ;;  %p2904_p0 = scmp.ne.s32.totalorder %s3510_s4, %s2903_s25  ;;  %s33_s22 = int_to_ptr.vmem [resolvable:$true] %s32_s22 }
   0x3   :  { %p2907_p1 = scmp.lt.u32.totalorder %s2903_s25, %s3510_s4 }
   0x5   :  { %p2909_p2 = pnand %p2907_p1, %p2904_p0 }
   0x7   :  { %2912 = shalt.err (!%p2909_p2)
}
   0x8   :  { %s2913_s30 = scalar_lea.vmem %s33_s22, 256  ;;  %p2918_p4 = scmp.lt.s32.totalorder %s33_s22, %s33_s22 }
   0x9   :  { %p2914_p3 = scmp.ne.s32.totalorder %s33_s22, %s2913_s30  ;;  %p2919_p5 = scmp.lt.s32.totalorder %s2913_s30, %s2913_s30 }
   0xb   :  { %p2920_p6 = por %p2919_p5, %p2918_p4 }
   0xd   :  { %p2921_p7 = pnand %p2920_p6, %p2914_p3 }
   0xf   :  { %2924 = shalt.err (!%p2921_p7)
}
  0x10   :  { %s2952_s13 = smov 128   ;;  %s2953_s14 = smov 8  }
  0x11   :  { %38 = dma.hbm_to_vmem [thread:$0]  %s3510_s4, 256, %s33_s22, [#allocation3], %s2952_s13, %s2952_s13, %s2953_s14  }
  0x12   :  { %2947 = dma.done.wait [#allocation3], 256  }
  0x13   :  { %2948 = vsyncadd [#allocation3], 4294967040  ;;  %v2954_v0 = vmov 0.0|0.0   ;;  %vm2955_vm0 = vmmov 0   ;;  %v2956_v1 = vmov 0.0   ;;  %vm73_vm1 = vcmask 130048  }
  0x14   :  { %2620 = vmatprep.subr.bf16.mxu1 %v2954_v0  ;;  %2347 = vmatprep.mubr.msk.f32.mxu1 %vm2955_vm0, %v2956_v1  ;;  %v64_v2 = vld [vmem:[%s3507_s1] sm:$0xff]  ;;  %v65_v3 = vld [vmem:[%s3507_s1 + $0x8] sm:$0xff]  ;;  %v212_v9 = vld [vmem:[%s3508_s2 + $0x10] sm:$0xff]  ;;  %s2958_s4 = smov 96   ;;  %vm214_vm2 = vcmask 261120   ;;  %vm327_vm3 = vcmask 523264  }
  0x15   :  { %v210_v4 = vld [vmem:[%s3508_s2] sm:$0xff]  ;;  %v2616_v5 = vpack.c.bf16 %v65_v3, %v64_v2  ;;  %v211_v6 = vld [vmem:[%s3508_s2 + $0x8] sm:$0xff]  ;;  %v213_v10 = vld [vmem:[%s3508_s2 + $0x18] sm:$0xff]  ;;  %s2957_s2 = smov 64   ;;  %s2959_s21 = smov 32  }
  0x16   :  { %v56_v7 = vld [vmem:[%s3506_s0] sm:$0xff]  ;;  %v3056_v8 = vpack.c.bf16 %v211_v6, %v210_v4  ;;  %v57_v11 = vld [vmem:[%s3506_s0 + $0x8] sm:$0xff]  ;;  %v3069_v12 = vpack.c.bf16 %v213_v10, %v212_v9  ;;  %v58_v30 = vld [vmem:[%s3506_s0 + $0x10] sm:$0xff]  ;;  %s2960_s23 = smov [#allocation5]  }
  0x17   :  { %2327 = vmatprep.mubr.msk.f32.mxu0 %vm73_vm1, %v56_v7  ;;  %2617 = vmatprep.subr.bf16.mxu0 %v2616_v5  ;;  %v3089_v17 = vld [vmem:[%s3509_s3] ss:$0 sm:$0xff]  ;;  %v320_v29 = vld [vmem:[%s3512_s6 + $0x8] sm:$0xff]  ;;  %v59_v32 = vld [vmem:[%s3506_s0 + $0x18] sm:$0xff]  ;;  %s2126_s24 = sshll.u32 %s2960_s23, 4  ;;  %s2127_s24 = int_to_ptr.vmem [resolvable:$true] %s2126_s24 }
  0x18   :  { %2622 = vmatpush3.bf16.msra.mxu1 %v3056_v8  ;;  %2619 = vmatpush3.bf16.msra.mxu0 %v2616_v5  ;;  %v319_v28 = vld [vmem:[%s3512_s6] sm:$0xff]  ;;  %v321_v33 = vld [vmem:[%s3512_s6 + $0x10] sm:$0xff]  ;;  %v322_v34 = vld [vmem:[%s3512_s6 + $0x18] sm:$0xff]  ;;  %s2925_s25 = scalar_lea.vmem %s2127_s24, 128  ;;  %p2930_p9 = scmp.lt.s32.totalorder %s2127_s24, %s2127_s24 }
  0x19   :  { %2623 = vmatprep.subr.bf16.mxu1 %v2954_v0  ;;  %2626 = vmatprep.subr.bf16.mxu0 %v2954_v0  ;;  %v3102_v31 = vpack.c.bf16 %v320_v29, %v319_v28  ;;  %v60_v35 = vld [vmem:[%s3506_s0 + $0x20] sm:$0xff]  ;;  %v3119_v36 = vpack.c.bf16 %v322_v34, %v321_v33  ;;  %v61_v37 = vld [vmem:[%s3506_s0 + $0x28] sm:$0xff]  ;;  %v62_v40 = vld [vmem:[%s3506_s0 + $0x30] sm:$0xff]  ;;  %p2926_p8 = scmp.ne.s32.totalorder %s2127_s24, %s2925_s25  ;;  %p2931_p10 = scmp.lt.s32.totalorder %s2925_s25, %s2925_s25 }
  0x1a   :  { %v323_v38 = vld [vmem:[%s3512_s6 + $0x20] sm:$0xff]  ;;  %v324_v39 = vld [vmem:[%s3512_s6 + $0x28] sm:$0xff]  ;;  %v3143_v42 = vld [vmem:[%s3506_s0 + $0x38] sm:$0xff] }
  0x1b   :  { %2328 = vmatmul.mubr.msk.f32.vlgmr.msra.gmra.mrb[0].mxu0 %vm73_vm1, %v57_v11  ;;  %v3137_v41 = vpack.c.bf16 %v324_v39, %v323_v38  ;;  %v325_v44 = vld [vmem:[%s3512_s6 + $0x30] sm:$0xff]  ;;  %v326_v45 = vld [vmem:[%s3512_s6 + $0x38] sm:$0xff]  ;;  %v3205_v60 = vld [vmem:[%s3513_s7] ss:$0 sm:$0xff]  ;;  %p2932_p11 = por %p2931_p10, %p2930_p9 }
  0x1c   :  { %2625 = vmatpush3.bf16.msra.mxu1 %v3069_v12  ;;  %2330 = vmatprep.mubr.msk.f32.mxu0 %vm73_vm1, %v58_v30  ;;  %v3156_v46 = vpack.c.bf16 %v326_v45, %v325_v44 }
  0x1d   :  { %2638 = vmatprep.subr.bf16.mxu1 %v2954_v0  ;;  %2628 = vmatpush3.bf16.msra.mxu0 %v3102_v31  ;;  %p2933_p12 = pnand %p2932_p11, %p2926_p8 }
  0x1e   :  { %2629 = vmatprep.subr.bf16.mxu0 %v2954_v0 }
  0x1f   :  { %2348 = vmatmul.mubr.f32.vlgmr.msra.gmra.mrb[0].mxu1 %v2956_v1  ;;  %2331 = vmatmul.mubr.msk.f32.gmra.mrb[2].mxu0 %vm73_vm1, %v59_v32 }
  0x20   :  { %2640 = vmatpush3.bf16.msra.mxu1 %v3056_v8  ;;  %2377 = vmatprep.mubr.msk.f32.mxu1 %vm2955_vm0, %v2956_v1 }
  0x21   :  { %2641 = vmatprep.subr.bf16.mxu1 %v2954_v0  ;;  %2333 = vmatprep.mubr.msk.f32.mxu0 %vm73_vm1, %v60_v35 }
  0x22   :  { %2631 = vmatpush3.bf16.msra.mxu0 %v3119_v36 }
  0x23   :  { %2334 = vmatmul.mubr.msk.f32.gmra.mrb[4].mxu0 %vm73_vm1, %v61_v37  ;;  %2632 = vmatprep.subr.bf16.mxu0 %v2954_v0 }
  0x24   :  { %2643 = vmatpush3.bf16.msra.mxu1 %v3069_v12  ;;  %2336 = vmatprep.mubr.msk.f32.mxu0 %vm73_vm1, %v62_v40 }
  0x25   :  { %2644 = vmatprep.subr.bf16.mxu1 %v2954_v0 }
  0x26   :  { %2634 = vmatpush3.bf16.msra.mxu0 %v3137_v41 }
  0x27   :  { %2337 = vmatmul.mubr.msk.f32.gmra.mrb[6].mxu0 %vm73_vm1, %v3143_v42  ;;  %2635 = vmatprep.subr.bf16.mxu0 %v2954_v0 }
  0x28   :  { %2366 = vmatprep.mubr.msk.f32.mxu0 %vm2955_vm0, %v2956_v1 }
  0x2a   :  { %2637 = vmatpush3.bf16.msra.mxu0 %v3156_v46 }
  0x2b   :  { %2662 = vmatprep.subr.bf16.mxu0 %v2954_v0 }
  0xee   :  { %v3083_v13 = vpop.f32.mrb[0].mxu0 }
  0xef   :  { %v164_v14 = vpop.f32.mrb[1].mxu0  ;;  %v170_v4 = vadd.f32 %v3083_v13, %v3089_v17 }
  0xf0   :  { %v165_v18 = vadd.f32 %v3089_v17, %v164_v14 }
  0xf2   :  { %v284_v15 = vpop.f32.mrb[0].mxu1  ;;  %v3167_v52 = vpop.f32.mrb[2].mxu0 }
  0xf3   :  { %296 = vrot.lane.b32.xlu0 %v284_v15, %s2957_s2  ;;  %v2349_v16 = vpop.f32.mrb[1].mxu1  ;;  %v288_v19 = vadd.f32 %v284_v15, %v165_v18  ;;  %v3169_v53 = vpop.f32.mrb[3].mxu0 }
  0xf5   :  { %v2145_v20 = vmul.f32 -1.442695, %v288_v19 }
  0xf6   :  { %v3171_v54 = vpop.f32.mrb[4].mxu0 }
  0xf7   :  { %2795 = vpow2.f32 %v2145_v20  ;;  %v3173_v55 = vpop.f32.mrb[5].mxu0 }
  0xfa   :  { %v3175_v56 = vpop.f32.mrb[6].mxu0 }
  0xfb   :  { %v3177_v57 = vpop.f32.mrb[7].mxu0 }
 0x101   :  { %v2796_v21 = vpop.eup %2795 }
 0x102   :  { %v292_v22 = vadd.f32 1.0, %v2796_v21 }
 0x104   :  { %2797 = vrcp.f32 %v292_v22 }
 0x10e   :  { %v2798_v23 = vpop.eup %2797 }
 0x10f   :  { %v306_v47 = vsub.f32 1.0, %v2798_v23  ;;  %v312_v49 = vmul.f32 0.0, %v2798_v23 }
 0x165   :  { %v297_v24 = vpop.permute.xlu0 %296 }
 0x166   :  { %v299_v25 = vmul.f32 %v2798_v23, %v297_v24 }
 0x168   :  { %301 = vrot.lane.b32.xlu0 %v299_v25, %s2957_s2 }
 0x1da   :  { %v302_v26 = vpop.permute.xlu0 %301 }
 0x1db   :  { %v304_v27 = vadd.f32 %v302_v26, %v165_v18 }
 0x1dd   :  { %2799 = vtanh.f32 %v304_v27 }
 0x1e7   :  { %v2800_v43 = vpop.eup %2799 }
 0x1e8   :  { %308 = vrot.lane.b32.xlu1 %v2800_v43, %s2958_s4 }
 0x25a   :  { %v309_v48 = vpop.permute.xlu1 %308 }
 0x25b   :  { %v311_v50 = vmul.f32 %v309_v48, %v306_v47  ;;  %v175_v48 = vadd.f32 %v3089_v17, %v3169_v53 }
 0x25d   :  { %v3163_v51 = vadd.f32 %v312_v49, %v311_v50 }
 0x25f   :  { %315 = vrot.lane.b32.xlu1 %v3163_v51, %s2958_s4 }
 0x2d1   :  { %v316_v58 = vpop.permute.xlu1 %315 }
 0x2d2   :  { %v318_v59 = vsel %vm214_vm2, %v316_v58, 0.0  ;;  %2378 = vmatmul.mubr.msk.f32.vlgmr.msra.gmra.mrb[2].mxu1 %vm214_vm2, %v316_v58 }
 0x2d3   :  { %2367 = vmatmul.mubr.msk.f32.vlgmr.msra.gmra.mrb[8].mxu0 %vm327_vm3, %v318_v59  ;;  %2646 = vmatpush3.bf16.msra.mxu1 %v3102_v31 }
 0x2d4   :  { %2647 = vmatprep.subr.bf16.mxu1 %v2954_v0  ;;  %2396 = vmatprep.mubr.msk.f32.mxu1 %vm2955_vm0, %v2956_v1 }
 0x2d5   :  { %2664 = vmatpush3.bf16.msra.mxu0 %v3102_v31  ;;  %2426 = vmatprep.mubr.msk.f32.mxu0 %vm2955_vm0, %v2956_v1 }
 0x2d6   :  { %2665 = vmatprep.subr.bf16.mxu0 %v2954_v0 }
 0x2d7   :  { %2649 = vmatpush3.bf16.msra.mxu1 %v3119_v36 }
 0x2d8   :  { %2650 = vmatprep.subr.bf16.mxu1 %v2954_v0 }
 0x2d9   :  { %2667 = vmatpush3.bf16.msra.mxu0 %v3119_v36 }
 0x2da   :  { %2668 = vmatprep.subr.bf16.mxu0 %v2954_v0 }
 0x2db   :  { %2652 = vmatpush3.bf16.msra.mxu1 %v3137_v41 }
 0x2dc   :  { %2653 = vmatprep.subr.bf16.mxu1 %v2954_v0 }
 0x2dd   :  { %2670 = vmatpush3.bf16.msra.mxu0 %v3137_v41 }
 0x2de   :  { %2671 = vmatprep.subr.bf16.mxu0 %v2954_v0 }
 0x2df   :  { %2655 = vmatpush3.bf16.msra.mxu1 %v3156_v46 }
 0x2e0   :  { %2656 = vmatprep.subr.bf16.mxu1 %v2954_v0 }
 0x2e1   :  { %2673 = vmatpush3.bf16.msra.mxu0 %v3156_v46 }
 0x2e2   :  { %2692 = vmatprep.subr.bf16.mxu0 %v2954_v0 }
 0x3a5   :  { %v494_v61 = vpop.f32.mrb[2].mxu1 }
 0x3a6   :  { %506 = vrot.lane.b32.xlu0 %v494_v61, %s2957_s2  ;;  %v397_v62 = vpop.f32.mrb[8].mxu0  ;;  %v2379_v63 = vpop.f32.mrb[3].mxu1  ;;  %v498_v5 = vadd.f32 %v494_v61, %v170_v4 }
 0x3a7   :  { %v398_v2 = vadd.f32 %v3205_v60, %v397_v62  ;;  %v2368_v3 = vpop.f32.mrb[9].mxu0 }
 0x3a8   :  { %v2149_v6 = vmul.f32 -1.442695, %v498_v5 }
 0x3a9   :  { %408 = vrot.lane.b32.xlu1 %v398_v2, %s2959_s21  ;;  %v2147_v7 = vmul.f32 -1.442695, %v398_v2 }
 0x3aa   :  { %2801 = vpow2.f32 %v2149_v6 }
 0x3ab   :  { %2803 = vpow2.f32 %v2147_v7 }
 0x3b4   :  { %v2802_v9 = vpop.eup %2801 }
 0x3b5   :  { %v2804_v10 = vpop.eup %2803  ;;  %v502_v11 = vadd.f32 1.0, %v2802_v9 }
 0x3b6   :  { %v404_v14 = vadd.f32 1.0, %v2804_v10 }
 0x3b7   :  { %2805 = vrcp.f32 %v502_v11 }
 0x3b8   :  { %2807 = vrcp.f32 %v404_v14 }
 0x3c1   :  { %v2806_v15 = vpop.eup %2805 }
 0x3c2   :  { %v2808_v19 = vpop.eup %2807  ;;  %v516_v27 = vsub.f32 1.0, %v2806_v15  ;;  %v522_v29 = vmul.f32 %v2806_v15, %v3163_v51 }
 0x3c3   :  { %v418_v34 = vsub.f32 1.0, %v2808_v19  ;;  %v424_v37 = vmul.f32 0.0, %v2808_v19 }
 0x418   :  { %v507_v16 = vpop.permute.xlu0 %506 }
 0x419   :  { %v509_v18 = vmul.f32 %v2806_v15, %v507_v16 }
 0x41b   :  { %511 = vrot.lane.b32.xlu0 %v509_v18, %s2957_s2  ;;  %v409_v20 = vpop.permute.xlu1 %408 }
 0x41c   :  { %v411_v21 = vmul.f32 %v2808_v19, %v409_v20 }
 0x41e   :  { %413 = vrot.lane.b32.xlu1 %v411_v21, %s2957_s2 }
 0x48d   :  { %v512_v13 = vpop.permute.xlu0 %511 }
 0x48e   :  { %v514_v22 = vadd.f32 %v512_v13, %v170_v4 }
 0x490   :  { %2809 = vtanh.f32 %v514_v22  ;;  %v414_v23 = vpop.permute.xlu1 %413 }
 0x491   :  { %v416_v24 = vadd.f32 %v414_v23, %v398_v2 }
 0x493   :  { %2811 = vtanh.f32 %v416_v24 }
 0x49a   :  { %v2810_v25 = vpop.eup %2809 }
 0x49b   :  { %518 = vrot.lane.b32.xlu0 %v2810_v25, %s2958_s4 }
 0x49d   :  { %v2812_v26 = vpop.eup %2811 }
 0x49e   :  { %420 = vrot.lane.b32.xlu1 %v2812_v26, %s2958_s4 }
 0x50d   :  { %v519_v28 = vpop.permute.xlu0 %518 }
 0x50e   :  { %v521_v30 = vmul.f32 %v519_v28, %v516_v27 }
 0x510   :  { %v523_v32 = vadd.f32 %v522_v29, %v521_v30  ;;  %v421_v33 = vpop.permute.xlu1 %420  ;;  %v180_v30 = vadd.f32 %v3167_v52, %v3089_v17 }
 0x511   :  { %v423_v35 = vmul.f32 %v421_v33, %v418_v34 }
 0x512   :  { %525 = vrot.lane.b32.xlu0 %v523_v32, %s2958_s4 }
 0x513   :  { %v3218_v38 = vadd.f32 %v424_v37, %v423_v35 }
 0x584   :  { %v526_v39 = vpop.permute.xlu0 %525 }
 0x585   :  { %v528_v40 = vsel %vm214_vm2, %v526_v39, %v3218_v38 }
 0x586   :  { %2397 = vmatmul.mubr.msk.f32.vlgmr.msra.gmra.mrb[4].mxu1 %vm327_vm3, %v528_v40 }
 0x587   :  { %2658 = vmatpush3.bf16.msra.mxu1 %v3056_v8  ;;  %2407 = vmatprep.mubr.msk.f32.mxu1 %vm2955_vm0, %v2956_v1 }
 0x588   :  { %2659 = vmatprep.subr.bf16.mxu1 %v2954_v0 }
 0x58b   :  { %2661 = vmatpush3.bf16.msra.mxu1 %v3069_v12 }
 0x58c   :  { %2674 = vmatprep.subr.bf16.mxu1 %v2954_v0 }
 0x58e   :  { %2408 = vmatmul.mubr.msk.f32.vlgmr.msra.gmra.mrb[6].mxu1 %vm214_vm2, %v526_v39 }
 0x58f   :  { %2676 = vmatpush3.bf16.msra.mxu1 %v3056_v8  ;;  %2437 = vmatprep.mubr.msk.f32.mxu1 %vm2955_vm0, %v2956_v1 }
 0x590   :  { %2677 = vmatprep.subr.bf16.mxu1 %v2954_v0 }
 0x593   :  { %2679 = vmatpush3.bf16.msra.mxu1 %v3069_v12 }
 0x594   :  { %2680 = vmatprep.subr.bf16.mxu1 %v2954_v0 }
 0x659   :  { %v598_v43 = vpop.f32.mrb[4].mxu1 }
 0x65a   :  { %v2398_v44 = vpop.f32.mrb[5].mxu1  ;;  %v599_v4 = vadd.f32 %v3205_v60, %v598_v43 }
 0x65c   :  { %v2151_v53 = vmul.f32 -1.442695, %v599_v4 }
 0x661   :  { %v695_v45 = vpop.f32.mrb[6].mxu1 }
 0x662   :  { %707 = vrot.lane.b32.xlu1 %v695_v45, %s2957_s2  ;;  %v2409_v47 = vpop.f32.mrb[7].mxu1  ;;  %v699_v49 = vadd.f32 %v695_v45, %v175_v48 }
 0x664   :  { %v2153_v50 = vmul.f32 -1.442695, %v699_v49 }
 0x666   :  { %2813 = vpow2.f32 %v2153_v50 }
 0x670   :  { %v2814_v51 = vpop.eup %2813 }
 0x671   :  { %v703_v58 = vadd.f32 1.0, %v2814_v51 }
 0x673   :  { %2815 = vrcp.f32 %v703_v58 }
 0x67d   :  { %v2816_v59 = vpop.eup %2815 }
 0x67e   :  { %v717_v7 = vsub.f32 1.0, %v2816_v59  ;;  %v723_v10 = vmul.f32 %v2816_v59, %v523_v32 }
 0x6d4   :  { %v708_v61 = vpop.permute.xlu1 %707 }
 0x6d5   :  { %v710_v62 = vmul.f32 %v2816_v59, %v708_v61 }
 0x6d7   :  { %712 = vrot.lane.b32.xlu0 %v710_v62, %s2957_s2 }
 0x749   :  { %v713_v63 = vpop.permute.xlu0 %712 }
 0x74a   :  { %v715_v2 = vadd.f32 %v713_v63, %v175_v48 }
 0x74c   :  { %2817 = vtanh.f32 %v715_v2 }
 0x74d   :  { %2819 = vpow2.f32 %v2151_v53 }
 0x756   :  { %v2818_v3 = vpop.eup %2817 }
 0x757   :  { %719 = vrot.lane.b32.xlu1 %v2818_v3, %s2958_s4  ;;  %v2820_v5 = vpop.eup %2819 }
 0x758   :  { %v605_v6 = vadd.f32 1.0, %v2820_v5 }
 0x75a   :  { %2821 = vrcp.f32 %v605_v6 }
 0x75b   :  { %609 = vrot.lane.b32.xlu1 %v599_v4, %s2959_s21 }
 0x764   :  { %v2822_v16 = vpop.eup %2821 }
 0x765   :  { %v619_v22 = vsub.f32 1.0, %v2822_v16  ;;  %v625_v24 = vmul.f32 %v2822_v16, %v3218_v38 }
 0x7c9   :  { %v720_v9 = vpop.permute.xlu1 %719 }
 0x7ca   :  { %v722_v11 = vmul.f32 %v720_v9, %v717_v7 }
 0x7cc   :  { %v3243_v14 = vadd.f32 %v723_v10, %v722_v11 }
 0x7cd   :  { %v610_v15 = vpop.permute.xlu1 %609 }
 0x7ce   :  { %726 = vrot.lane.b32.xlu0 %v3243_v14, %s2958_s4  ;;  %v612_v18 = vmul.f32 %v2822_v16, %v610_v15 }
 0x7d2   :  { %614 = vrot.lane.b32.xlu0 %v612_v18, %s2957_s2 }
 0x840   :  { %v727_v19 = vpop.permute.xlu0 %726 }
 0x841   :  { %2438 = vmatmul.mubr.msk.f32.vlgmr.msra.gmra.mrb[8].mxu1 %vm214_vm2, %v727_v19 }
 0x842   :  { %2682 = vmatpush3.bf16.msra.mxu1 %v3102_v31  ;;  %2456 = vmatprep.mubr.msk.f32.mxu1 %vm2955_vm0, %v2956_v1 }
 0x843   :  { %2683 = vmatprep.subr.bf16.mxu1 %v2954_v0 }
 0x844   :  { %v615_v20 = vpop.permute.xlu0 %614 }
 0x845   :  { %v617_v21 = vadd.f32 %v615_v20, %v599_v4 }
 0x846   :  { %2685 = vmatpush3.bf16.msra.mxu1 %v3119_v36 }
 0x847   :  { %2823 = vtanh.f32 %v617_v21  ;;  %2686 = vmatprep.subr.bf16.mxu1 %v2954_v0 }
 0x84a   :  { %2688 = vmatpush3.bf16.msra.mxu1 %v3137_v41 }
 0x84b   :  { %2689 = vmatprep.subr.bf16.mxu1 %v2954_v0 }
 0x84e   :  { %2691 = vmatpush3.bf16.msra.mxu1 %v3156_v46 }
 0x84f   :  { %2710 = vmatprep.subr.bf16.mxu1 %v2954_v0 }
 0x851   :  { %v2824_v13 = vpop.eup %2823 }
 0x852   :  { %621 = vrot.lane.b32.xlu0 %v2824_v13, %s2958_s4 }
 0x8c4   :  { %v622_v23 = vpop.permute.xlu0 %621 }
 0x8c5   :  { %v624_v25 = vmul.f32 %v622_v23, %v619_v22 }
 0x8c7   :  { %v3261_v26 = vadd.f32 %v625_v24, %v624_v25 }
 0x8c9   :  { %v729_v27 = vsel %vm214_vm2, %v727_v19, %v3261_v26  ;;  %v185_v19 = vadd.f32 %v3089_v17, %v3173_v55 }
 0x8ca   :  { %2427 = vmatmul.mubr.msk.f32.vlgmr.msra.gmra.mrb[10].mxu0 %vm327_vm3, %v729_v27 }
 0x8cb   :  { %2694 = vmatpush3.bf16.msra.mxu0 %v3056_v8  ;;  %2467 = vmatprep.mubr.msk.f32.mxu0 %vm2955_vm0, %v2956_v1 }
 0x8cc   :  { %2695 = vmatprep.subr.bf16.mxu0 %v2954_v0 }
 0x8cf   :  { %2697 = vmatpush3.bf16.msra.mxu0 %v3069_v12 }
 0x8d0   :  { %2698 = vmatprep.subr.bf16.mxu0 %v2954_v0 }
 0x914   :  { %v896_v28 = vpop.f32.mrb[8].mxu1 }
 0x915   :  { %908 = vrot.lane.b32.xlu1 %v896_v28, %s2957_s2  ;;  %v2439_v29 = vpop.f32.mrb[9].mxu1  ;;  %v900_v32 = vadd.f32 %v896_v28, %v180_v30 }
 0x917   :  { %v2157_v33 = vmul.f32 -1.442695, %v900_v32 }
 0x919   :  { %2825 = vpow2.f32 %v2157_v33 }
 0x923   :  { %v2826_v34 = vpop.eup %2825 }
 0x924   :  { %v904_v35 = vadd.f32 1.0, %v2826_v34 }
 0x926   :  { %2827 = vrcp.f32 %v904_v35 }
 0x930   :  { %v2828_v37 = vpop.eup %2827 }
 0x931   :  { %v918_v51 = vsub.f32 1.0, %v2828_v37  ;;  %v924_v59 = vmul.f32 %v2828_v37, %v3243_v14 }
 0x987   :  { %v909_v38 = vpop.permute.xlu1 %908 }
 0x988   :  { %v911_v39 = vmul.f32 %v2828_v37, %v909_v38 }
 0x98a   :  { %913 = vrot.lane.b32.xlu1 %v911_v39, %s2957_s2 }
 0x99d   :  { %v799_v40 = vpop.f32.mrb[10].mxu0 }
 0x99e   :  { %v2428_v43 = vpop.f32.mrb[11].mxu0  ;;  %v800_v52 = vadd.f32 %v3205_v60, %v799_v40 }
 0x9a0   :  { %v2155_v48 = vmul.f32 -1.442695, %v800_v52 }
 0x9fc   :  { %v914_v44 = vpop.permute.xlu1 %913 }
 0x9fd   :  { %v916_v45 = vadd.f32 %v914_v44, %v180_v30 }
 0x9ff   :  { %2829 = vtanh.f32 %v916_v45 }
 0xa00   :  { %2831 = vpow2.f32 %v2155_v48 }
 0xa09   :  { %v2830_v47 = vpop.eup %2829 }
 0xa0a   :  { %920 = vrot.lane.b32.xlu0 %v2830_v47, %s2958_s4  ;;  %v2832_v49 = vpop.eup %2831 }
 0xa0b   :  { %v806_v50 = vadd.f32 1.0, %v2832_v49 }
 0xa0d   :  { %2833 = vrcp.f32 %v806_v50 }
 0xa0e   :  { %810 = vrot.lane.b32.xlu0 %v800_v52, %s2959_s21 }
 0xa17   :  { %v2834_v2 = vpop.eup %2833 }
 0xa18   :  { %v820_v7 = vsub.f32 1.0, %v2834_v2  ;;  %v826_v10 = vmul.f32 %v2834_v2, %v3261_v26 }
 0xa7c   :  { %v921_v58 = vpop.permute.xlu0 %920 }
 0xa7d   :  { %v923_v61 = vmul.f32 %v921_v58, %v918_v51 }
 0xa7f   :  { %v3280_v62 = vadd.f32 %v924_v59, %v923_v61 }
 0xa80   :  { %v811_v63 = vpop.permute.xlu0 %810 }
 0xa81   :  { %927 = vrot.lane.b32.xlu1 %v3280_v62, %s2958_s4  ;;  %v813_v3 = vmul.f32 %v2834_v2, %v811_v63 }
 0xa85   :  { %815 = vrot.lane.b32.xlu1 %v813_v3, %s2957_s2  ;;  %v190_v3 = vadd.f32 %v3171_v54, %v3089_v17 }
 0xaf3   :  { %v928_v4 = vpop.permute.xlu1 %927 }
 0xaf4   :  { %2468 = vmatmul.mubr.msk.f32.vlgmr.msra.gmra.mrb[12].mxu0 %vm214_vm2, %v928_v4 }
 0xaf5   :  { %2700 = vmatpush3.bf16.msra.mxu0 %v3102_v31  ;;  %2486 = vmatprep.mubr.msk.f32.mxu0 %vm2955_vm0, %v2956_v1 }
 0xaf6   :  { %2701 = vmatprep.subr.bf16.mxu0 %v2954_v0 }
 0xaf7   :  { %v816_v53 = vpop.permute.xlu1 %815 }
 0xaf8   :  { %v818_v5 = vadd.f32 %v816_v53, %v800_v52 }
 0xaf9   :  { %2703 = vmatpush3.bf16.msra.mxu0 %v3119_v36 }
 0xafa   :  { %2835 = vtanh.f32 %v818_v5  ;;  %2704 = vmatprep.subr.bf16.mxu0 %v2954_v0 }
 0xafd   :  { %2706 = vmatpush3.bf16.msra.mxu0 %v3137_v41 }
 0xafe   :  { %2707 = vmatprep.subr.bf16.mxu0 %v2954_v0 }
 0xb01   :  { %2709 = vmatpush3.bf16.msra.mxu0 %v3156_v46 }
 0xb02   :  { %2728 = vmatprep.subr.bf16.mxu0 %v2954_v0 }
 0xb04   :  { %v2836_v6 = vpop.eup %2835 }
 0xb05   :  { %822 = vrot.lane.b32.xlu0 %v2836_v6, %s2958_s4 }
 0xb77   :  { %v823_v9 = vpop.permute.xlu0 %822 }
 0xb78   :  { %v825_v11 = vmul.f32 %v823_v9, %v820_v7 }
 0xb7a   :  { %v3298_v14 = vadd.f32 %v826_v10, %v825_v11 }
 0xb7c   :  { %v930_v15 = vsel %vm214_vm2, %v928_v4, %v3298_v14 }
 0xb7d   :  { %2457 = vmatmul.mubr.msk.f32.vlgmr.msra.gmra.mrb[10].mxu1 %vm327_vm3, %v930_v15 }
 0xb7e   :  { %2712 = vmatpush3.bf16.msra.mxu1 %v3056_v8  ;;  %2497 = vmatprep.mubr.msk.f32.mxu1 %vm2955_vm0, %v2956_v1 }
 0xb7f   :  { %2713 = vmatprep.subr.bf16.mxu1 %v2954_v0 }
 0xb82   :  { %2715 = vmatpush3.bf16.msra.mxu1 %v3069_v12 }
 0xb83   :  { %2716 = vmatprep.subr.bf16.mxu1 %v2954_v0 }
 0xbc7   :  { %v1097_v16 = vpop.f32.mrb[12].mxu0 }
 0xbc8   :  { %1109 = vrot.lane.b32.xlu1 %v1097_v16, %s2957_s2  ;;  %v2469_v18 = vpop.f32.mrb[13].mxu0  ;;  %v1101_v20 = vadd.f32 %v1097_v16, %v185_v19 }
 0xbca   :  { %v2161_v21 = vmul.f32 -1.442695, %v1101_v20 }
 0xbcc   :  { %2837 = vpow2.f32 %v2161_v21 }
 0xbd6   :  { %v2838_v13 = vpop.eup %2837 }
 0xbd7   :  { %v1105_v22 = vadd.f32 1.0, %v2838_v13 }
 0xbd9   :  { %2839 = vrcp.f32 %v1105_v22 }
 0xbe3   :  { %v2840_v23 = vpop.eup %2839 }
 0xbe4   :  { %v1119_v35 = vsub.f32 1.0, %v2840_v23  ;;  %v1125_v38 = vmul.f32 %v2840_v23, %v3280_v62 }
 0xc3a   :  { %v1110_v24 = vpop.permute.xlu1 %1109 }
 0xc3b   :  { %v1112_v25 = vmul.f32 %v2840_v23, %v1110_v24 }
 0xc3d   :  { %1114 = vrot.lane.b32.xlu0 %v1112_v25, %s2957_s2 }
 0xc50   :  { %v1000_v26 = vpop.f32.mrb[10].mxu1 }
 0xc51   :  { %v2458_v27 = vpop.f32.mrb[11].mxu1  ;;  %v1001_v55 = vadd.f32 %v3205_v60, %v1000_v26 }
 0xc53   :  { %v2159_v32 = vmul.f32 -1.442695, %v1001_v55 }
 0xcaf   :  { %v1115_v28 = vpop.permute.xlu0 %1114 }
 0xcb0   :  { %v1117_v29 = vadd.f32 %v1115_v28, %v185_v19 }
 0xcb2   :  { %2841 = vtanh.f32 %v1117_v29 }
 0xcb3   :  { %2843 = vpow2.f32 %v2159_v32 }
 0xcbc   :  { %v2842_v30 = vpop.eup %2841 }
 0xcbd   :  { %1121 = vrot.lane.b32.xlu1 %v2842_v30, %s2958_s4  ;;  %v2844_v33 = vpop.eup %2843 }
 0xcbe   :  { %v1007_v34 = vadd.f32 1.0, %v2844_v33 }
 0xcc0   :  { %2845 = vrcp.f32 %v1007_v34 }
 0xcc1   :  { %1011 = vrot.lane.b32.xlu1 %v1001_v55, %s2959_s21 }
 0xcca   :  { %v2846_v44 = vpop.eup %2845 }
 0xccb   :  { %v1021_v50 = vsub.f32 1.0, %v2846_v44  ;;  %v1027_v58 = vmul.f32 %v2846_v44, %v3298_v14 }
 0xd2f   :  { %v1122_v37 = vpop.permute.xlu1 %1121 }
 0xd30   :  { %v1124_v39 = vmul.f32 %v1122_v37, %v1119_v35 }
 0xd32   :  { %v3317_v40 = vadd.f32 %v1125_v38, %v1124_v39 }
 0xd33   :  { %v1012_v43 = vpop.permute.xlu1 %1011 }
 0xd34   :  { %1128 = vrot.lane.b32.xlu0 %v3317_v40, %s2958_s4  ;;  %v1014_v45 = vmul.f32 %v2846_v44, %v1012_v43 }
 0xd38   :  { %1016 = vrot.lane.b32.xlu0 %v1014_v45, %s2957_s2 }
 0xda6   :  { %v1129_v47 = vpop.permute.xlu0 %1128 }
 0xda7   :  { %2498 = vmatmul.mubr.msk.f32.vlgmr.msra.gmra.mrb[12].mxu1 %vm214_vm2, %v1129_v47 }
 0xda8   :  { %2718 = vmatpush3.bf16.msra.mxu1 %v3102_v31  ;;  %2516 = vmatprep.mubr.msk.f32.mxu1 %vm2955_vm0, %v2956_v1 }
 0xda9   :  { %2719 = vmatprep.subr.bf16.mxu1 %v2954_v0 }
 0xdaa   :  { %v1017_v52 = vpop.permute.xlu0 %1016 }
 0xdab   :  { %v1019_v48 = vadd.f32 %v1017_v52, %v1001_v55 }
 0xdac   :  { %2721 = vmatpush3.bf16.msra.mxu1 %v3119_v36 }
 0xdad   :  { %2847 = vtanh.f32 %v1019_v48  ;;  %2722 = vmatprep.subr.bf16.mxu1 %v2954_v0 }
 0xdb0   :  { %2724 = vmatpush3.bf16.msra.mxu1 %v3137_v41 }
 0xdb1   :  { %2725 = vmatprep.subr.bf16.mxu1 %v2954_v0 }
 0xdb4   :  { %2727 = vmatpush3.bf16.msra.mxu1 %v3156_v46 }
 0xdb5   :  { %2746 = vmatprep.subr.bf16.mxu1 %v2954_v0 }
 0xdb7   :  { %v2848_v49 = vpop.eup %2847 }
 0xdb8   :  { %1023 = vrot.lane.b32.xlu1 %v2848_v49, %s2958_s4 }
 0xe2a   :  { %v1024_v51 = vpop.permute.xlu1 %1023 }
 0xe2b   :  { %v1026_v59 = vmul.f32 %v1024_v51, %v1021_v50 }
 0xe2d   :  { %v3335_v61 = vadd.f32 %v1027_v58, %v1026_v59 }
 0xe2f   :  { %v1131_v62 = vsel %vm214_vm2, %v1129_v47, %v3335_v61 }
 0xe30   :  { %2487 = vmatmul.mubr.msk.f32.vlgmr.msra.gmra.mrb[14].mxu0 %vm327_vm3, %v1131_v62 }
 0xe31   :  { %2730 = vmatpush3.bf16.msra.mxu0 %v3056_v8  ;;  %2527 = vmatprep.mubr.msk.f32.mxu0 %vm2955_vm0, %v2956_v1 }
 0xe32   :  { %2731 = vmatprep.subr.bf16.mxu0 %v2954_v0 }
 0xe35   :  { %2733 = vmatpush3.bf16.msra.mxu0 %v3069_v12 }
 0xe36   :  { %2734 = vmatprep.subr.bf16.mxu0 %v2954_v0 }
 0xe7a   :  { %v1298_v63 = vpop.f32.mrb[12].mxu1 }
 0xe7b   :  { %v2499_v2 = vpop.f32.mrb[13].mxu1  ;;  %1310 = vrot.lane.b32.xlu0 %v1298_v63, %s2957_s2  ;;  %v1302_v4 = vadd.f32 %v1298_v63, %v190_v3 }
 0xe7d   :  { %v2165_v53 = vmul.f32 -1.442695, %v1302_v4 }
 0xe7f   :  { %2849 = vpow2.f32 %v2165_v53 }
 0xe89   :  { %v2850_v5 = vpop.eup %2849 }
 0xe8a   :  { %v1306_v6 = vadd.f32 1.0, %v2850_v5 }
 0xe8c   :  { %2851 = vrcp.f32 %v1306_v6 }
 0xe96   :  { %v2852_v7 = vpop.eup %2851 }
 0xe97   :  { %v1320_v24 = vsub.f32 1.0, %v2852_v7  ;;  %v1326_v26 = vmul.f32 %v2852_v7, %v3317_v40 }
 0xeed   :  { %v1311_v9 = vpop.permute.xlu0 %1310 }
 0xeee   :  { %v1313_v10 = vmul.f32 %v2852_v7, %v1311_v9 }
 0xef0   :  { %1315 = vrot.lane.b32.xlu1 %v1313_v10, %s2957_s2 }
 0xf03   :  { %v1201_v11 = vpop.f32.mrb[14].mxu0 }
 0xf04   :  { %v1202_v14 = vadd.f32 %v3205_v60, %v1201_v11  ;;  %v2488_v15 = vpop.f32.mrb[15].mxu0 }
 0xf06   :  { %1212 = vrot.lane.b32.xlu1 %v1202_v14, %s2959_s21  ;;  %v2163_v16 = vmul.f32 -1.442695, %v1202_v14 }
 0xf08   :  { %2853 = vpow2.f32 %v2163_v16 }
 0xf12   :  { %v2854_v19 = vpop.eup %2853 }
 0xf13   :  { %v1208_v20 = vadd.f32 1.0, %v2854_v19 }
 0xf62   :  { %v1316_v54 = vpop.permute.xlu1 %1315 }
 0xf63   :  { %v1318_v18 = vadd.f32 %v1316_v54, %v190_v3 }
 0xf65   :  { %2855 = vtanh.f32 %v1318_v18 }
 0xf66   :  { %2857 = vrcp.f32 %v1208_v20 }
 0xf6f   :  { %v2856_v21 = vpop.eup %2855 }
 0xf70   :  { %1322 = vrot.lane.b32.xlu0 %v2856_v21, %s2958_s4  ;;  %v2858_v13 = vpop.eup %2857 }
 0xf71   :  { %v1222_v33 = vsub.f32 1.0, %v2858_v13  ;;  %v1228_v35 = vmul.f32 %v2858_v13, %v3335_v61 }
 0xf78   :  { %v1213_v22 = vpop.permute.xlu1 %1212 }
 0xf79   :  { %v1215_v23 = vmul.f32 %v2858_v13, %v1213_v22 }
 0xf7b   :  { %1217 = vrot.lane.b32.xlu1 %v1215_v23, %s2957_s2 }
 0xfe2   :  { %v1323_v25 = vpop.permute.xlu0 %1322 }
 0xfe3   :  { %v1325_v27 = vmul.f32 %v1323_v25, %v1320_v24 }
 0xfe5   :  { %v3355_v28 = vadd.f32 %v1326_v26, %v1325_v27 }
 0xfe7   :  { %1329 = vrot.lane.b32.xlu0 %v3355_v28, %s2958_s4 }
 0xfed   :  { %v1218_v29 = vpop.permute.xlu1 %1217 }
 0xfee   :  { %v1220_v30 = vadd.f32 %v1218_v29, %v1202_v14 }
 0xff0   :  { %2859 = vtanh.f32 %v1220_v30 }
 0xffa   :  { %v2860_v55 = vpop.eup %2859 }
 0xffb   :  { %1224 = vrot.lane.b32.xlu0 %v2860_v55, %s2958_s4 }
0x1059   :  { %v1330_v32 = vpop.permute.xlu0 %1329 }
0x105a   :  { %2528 = vmatmul.mubr.msk.f32.vlgmr.msra.gmra.mrb[16].mxu0 %vm214_vm2, %v1330_v32 }
0x105b   :  { %2736 = vmatpush3.bf16.msra.mxu0 %v3102_v31  ;;  %2546 = vmatprep.mubr.msk.f32.mxu0 %vm2955_vm0, %v2956_v1 }
0x105c   :  { %2737 = vmatprep.subr.bf16.mxu0 %v2954_v0 }
0x105f   :  { %2739 = vmatpush3.bf16.msra.mxu0 %v3119_v36 }
0x1060   :  { %2740 = vmatprep.subr.bf16.mxu0 %v2954_v0 }
0x1063   :  { %2742 = vmatpush3.bf16.msra.mxu0 %v3137_v41 }
0x1064   :  { %2743 = vmatprep.subr.bf16.mxu0 %v2954_v0 }
0x1067   :  { %2745 = vmatpush3.bf16.msra.mxu0 %v3156_v46 }
0x1068   :  { %2764 = vmatprep.subr.bf16.mxu0 %v2954_v0 }
0x106d   :  { %v1225_v34 = vpop.permute.xlu0 %1224 }
0x106e   :  { %v1227_v37 = vmul.f32 %v1225_v34, %v1222_v33  ;;  %v1833_v33 = vld [vmem:[#allocation2] sm:$0xff]  ;;  %v1834_v34 = vld [vmem:[#allocation2 + $0x8] sm:$0xff] }
0x1070   :  { %v1229_v38 = vadd.f32 %v1228_v35, %v1227_v37  ;;  %v2765_v37 = vpack.c.bf16 %v1834_v34, %v1833_v33 }
0x1072   :  { %v1332_v39 = vsel %vm214_vm2, %v1330_v32, %v1229_v38 }
0x1073   :  { %2517 = vmatmul.mubr.msk.f32.vlgmr.msra.gmra.mrb[14].mxu1 %vm327_vm3, %v1332_v39 }
0x1074   :  { %2748 = vmatpush3.bf16.msra.mxu1 %v3056_v8  ;;  %2557 = vmatprep.mubr.msk.f32.mxu1 %vm2955_vm0, %v2956_v1  ;;  %v195_v8 = vadd.f32 %v3089_v17, %v3177_v57 }
0x1075   :  { %2749 = vmatprep.subr.bf16.mxu1 %v2954_v0 }
0x1078   :  { %2751 = vmatpush3.bf16.msra.mxu1 %v3069_v12 }
0x1079   :  { %2752 = vmatprep.subr.bf16.mxu1 %v2954_v0 }
0x112d   :  { %v1499_v40 = vpop.f32.mrb[16].mxu0 }
0x112e   :  { %1511 = vrot.lane.b32.xlu1 %v1499_v40, %s2957_s2  ;;  %v2529_v43 = vpop.f32.mrb[17].mxu0  ;;  %v1503_v52 = vadd.f32 %v1499_v40, %v195_v8 }
0x1130   :  { %v2169_v48 = vmul.f32 -1.442695, %v1503_v52 }
0x1132   :  { %2861 = vpow2.f32 %v2169_v48 }
0x113c   :  { %v2862_v49 = vpop.eup %2861 }
0x113d   :  { %v1507_v12 = vadd.f32 1.0, %v2862_v49 }
0x113f   :  { %2863 = vrcp.f32 %v1507_v12  ;;  %v1925_v12 = vld [vmem:[%s3514_s8] sm:$0xff] }
0x1146   :  { %v1402_v44 = vpop.f32.mrb[14].mxu1 }
0x1147   :  { %v1403_v45 = vadd.f32 %v3205_v60, %v1402_v44  ;;  %v2518_v47 = vpop.f32.mrb[15].mxu1 }
0x1149   :  { %1413 = vrot.lane.b32.xlu1 %v1403_v45, %s2959_s21  ;;  %v2167_v50 = vmul.f32 -1.442695, %v1403_v45  ;;  %v2864_v51 = vpop.eup %2863 }
0x114a   :  { %v1521_v9 = vsub.f32 1.0, %v2864_v51  ;;  %v1527_v11 = vmul.f32 %v2864_v51, %v3355_v28 }
0x114b   :  { %2865 = vpow2.f32 %v2167_v50  ;;  %v1926_v50 = vld [vmem:[%s3514_s8 + $0x8] sm:$0xff] }
0x1155   :  { %v2866_v61 = vpop.eup %2865 }
0x1156   :  { %v1409_v62 = vadd.f32 1.0, %v2866_v61 }
0x1158   :  { %2867 = vrcp.f32 %v1409_v62 }
0x1162   :  { %v2868_v63 = vpop.eup %2867 }
0x1163   :  { %v1423_v54 = vsub.f32 1.0, %v2868_v63  ;;  %v1429_v19 = vmul.f32 %v2868_v63, %v1229_v38 }
0x11a0   :  { %v1512_v58 = vpop.permute.xlu1 %1511 }
0x11a1   :  { %v1514_v59 = vmul.f32 %v2864_v51, %v1512_v58  ;;  %v1927_v51 = vld [vmem:[%s3514_s8 + $0x10] sm:$0xff]  ;;  %v2768_v58 = vpack.c.bf16 %v1926_v50, %v1925_v12 }
0x11a3   :  { %1516 = vrot.lane.b32.xlu0 %v1514_v59, %s2957_s2  ;;  %v1928_v59 = vld [vmem:[%s3514_s8 + $0x18] sm:$0xff] }
0x11a4   :  { %v2771_v61 = vpack.c.bf16 %v1928_v59, %v1927_v51 }
0x11bb   :  { %v1414_v2 = vpop.permute.xlu1 %1413 }
0x11bc   :  { %v1416_v3 = vmul.f32 %v2868_v63, %v1414_v2 }
0x11be   :  { %1418 = vrot.lane.b32.xlu1 %v1416_v3, %s2957_s2 }
0x1215   :  { %v1517_v57 = vpop.permute.xlu0 %1516 }
0x1216   :  { %v1519_v4 = vadd.f32 %v1517_v57, %v195_v8  ;;  %v2176_v8 = vld [vmem:[%s3511_s5] ss:$0 sm:$0xff] }
0x1218   :  { %2869 = vtanh.f32 %v1519_v4 }
0x1222   :  { %v2870_v53 = vpop.eup %2869 }
0x1223   :  { %1523 = vrot.lane.b32.xlu0 %v2870_v53, %s2958_s4 }
0x1230   :  { %v1419_v5 = vpop.permute.xlu1 %1418 }
0x1231   :  { %v1421_v6 = vadd.f32 %v1419_v5, %v1403_v45 }
0x1233   :  { %2871 = vtanh.f32 %v1421_v6 }
0x123d   :  { %v2872_v7 = vpop.eup %2871 }
0x123e   :  { %1425 = vrot.lane.b32.xlu1 %v2872_v7, %s2958_s4 }
0x1295   :  { %v1524_v10 = vpop.permute.xlu0 %1523 }
0x1296   :  { %v1526_v14 = vmul.f32 %v1524_v10, %v1521_v9 }
0x1298   :  { %v3390_v15 = vadd.f32 %v1527_v11, %v1526_v14 }
0x129a   :  { %1530 = vrot.lane.b32.xlu0 %v3390_v15, %s2958_s4 }
0x12b0   :  { %v1426_v16 = vpop.permute.xlu1 %1425 }
0x12b1   :  { %v1428_v18 = vmul.f32 %v1426_v16, %v1423_v54 }
0x12b3   :  { %v3394_v20 = vadd.f32 %v1429_v19, %v1428_v18 }
0x130c   :  { %v1531_v21 = vpop.permute.xlu0 %1530 }
0x130d   :  { %v1533_v13 = vsel %vm214_vm2, %v1531_v21, %v3394_v20  ;;  %2558 = vmatmul.mubr.msk.f32.vlgmr.msra.gmra.mrb[16].mxu1 %vm214_vm2, %v1531_v21 }
0x130e   :  { %2547 = vmatmul.mubr.msk.f32.vlgmr.msra.gmra.mrb[18].mxu0 %vm327_vm3, %v1533_v13  ;;  %2754 = vmatpush3.bf16.msra.mxu1 %v3102_v31 }
0x130f   :  { %2583 = vmatprep.mubr.msk.f32.mxu0 %vm2955_vm0, %v2956_v1  ;;  %2755 = vmatprep.subr.bf16.mxu1 %v2954_v0 }
0x1310   :  { %2576 = vmatprep.mubr.msk.f32.mxu1 %vm2955_vm0, %v2956_v1  ;;  %2766 = vmatpush3.bf16.msra.mxu0 %v2765_v37  ;;  %v2031_v37 = vld [vmem:[%s3516_s10] sm:$0xff] }
0x1311   :  { %2767 = vmatprep.subr.bf16.mxu0 %v2954_v0 }
0x1312   :  { %2757 = vmatpush3.bf16.msra.mxu1 %v3119_v36  ;;  %v200_v36 = vadd.f32 %v3175_v56, %v3089_v17 }
0x1313   :  { %2758 = vmatprep.subr.bf16.mxu1 %v2954_v0  ;;  %2584 = vmatmul.mubr.msk.f32.vlgmr.msra.gmra.mrb[20].mxu0 %vm73_vm1, %v3143_v42 }
0x1314   :  { %2594 = vmatprep.mubr.msk.f32.mxu0 %vm2955_vm0, %v2956_v1  ;;  %2769 = vmatpush3.bf16.msra.mxu0 %v2768_v58 }
0x1315   :  { %2770 = vmatprep.subr.bf16.mxu0 %v2954_v0 }
0x1316   :  { %2760 = vmatpush3.bf16.msra.mxu1 %v3137_v41 }
0x1317   :  { %2761 = vmatprep.subr.bf16.mxu1 %v2954_v0 }
0x1318   :  { %2772 = vmatpush3.bf16.msra.mxu0 %v2771_v61 }
0x1319   :  { %2773 = vmatprep.subr.bf16.mxu0 %v2954_v0 }
0x131a   :  { %2763 = vmatpush3.bf16.msra.mxu1 %v3156_v46 }
0x13e0   :  { %v1700_v22 = vpop.f32.mrb[16].mxu1 }
0x13e1   :  { %1712 = vrot.lane.b32.xlu0 %v1700_v22, %s2957_s2  ;;  %v1603_v31 = vpop.f32.mrb[18].mxu0  ;;  %v2559_v23 = vpop.f32.mrb[17].mxu1  ;;  %v1704_v26 = vadd.f32 %v1700_v22, %v200_v36 }
0x13e2   :  { %v1604_v24 = vadd.f32 %v3205_v60, %v1603_v31  ;;  %v2548_v25 = vpop.f32.mrb[19].mxu0 }
0x13e3   :  { %v2173_v27 = vmul.f32 -1.442695, %v1704_v26 }
0x13e4   :  { %1614 = vrot.lane.b32.xlu1 %v1604_v24, %s2959_s21  ;;  %v2171_v41 = vmul.f32 -1.442695, %v1604_v24 }
0x13e5   :  { %2873 = vpow2.f32 %v2173_v27 }
0x13e6   :  { %2875 = vpow2.f32 %v2171_v41  ;;  %v1908_v42 = vpop.f32.mrb[20].mxu0 }
0x13e7   :  { %v1909_v52 = vadd.f32 %v2176_v8, %v1908_v42  ;;  %v2585_v48 = vpop.f32.mrb[21].mxu0  ;;  %v2037_v8 = vld [vmem:[%s3516_s10 + $0x30] sm:$0xff]  ;;  %v2038_v42 = vld [vmem:[%s3516_s10 + $0x38] sm:$0xff] }
0x13e9   :  { %v2178_v4 = vmul.f32 -1.442695, %v1909_v52 }
0x13ef   :  { %v2874_v28 = vpop.eup %2873 }
0x13f0   :  { %v2876_v46 = vpop.eup %2875  ;;  %v1708_v29 = vadd.f32 1.0, %v2874_v28 }
0x13f1   :  { %v1610_v30 = vadd.f32 1.0, %v2876_v46 }
0x13f2   :  { %2877 = vrcp.f32 %v1708_v29 }
0x13f3   :  { %2879 = vrcp.f32 %v1610_v30 }
0x13fc   :  { %v2878_v55 = vpop.eup %2877 }
0x13fd   :  { %v2880_v38 = vpop.eup %2879  ;;  %v1722_v62 = vsub.f32 1.0, %v2878_v55  ;;  %v1728_v2 = vmul.f32 %v2878_v55, %v3390_v15 }
0x13fe   :  { %v1624_v14 = vsub.f32 1.0, %v2880_v38  ;;  %v1630_v16 = vmul.f32 %v2880_v38, %v3394_v20  ;;  %v2179_v20 = vld [vmem:[%s3515_s9] ss:$0 sm:$0xff] }
0x1453   :  { %v1713_v32 = vpop.permute.xlu0 %1712 }
0x1454   :  { %v1715_v35 = vmul.f32 %v2878_v55, %v1713_v32 }
0x1456   :  { %1717 = vrot.lane.b32.xlu0 %v1715_v35, %s2957_s2  ;;  %v1615_v17 = vpop.permute.xlu1 %1614 }
0x1457   :  { %v1617_v56 = vmul.f32 %v2880_v38, %v1615_v17  ;;  %v2032_v38 = vld [vmem:[%s3516_s10 + $0x8] sm:$0xff]  ;;  %v2033_v17 = vld [vmem:[%s3516_s10 + $0x10] sm:$0xff] }
0x1459   :  { %1619 = vrot.lane.b32.xlu1 %v1617_v56, %s2957_s2  ;;  %v2774_v56 = vpack.c.bf16 %v2032_v38, %v2031_v37 }
0x14c8   :  { %v1718_v39 = vpop.permute.xlu0 %1717 }
0x14c9   :  { %v1720_v40 = vadd.f32 %v1718_v39, %v200_v36  ;;  %v2034_v39 = vld [vmem:[%s3516_s10 + $0x18] sm:$0xff] }
0x14cb   :  { %2881 = vtanh.f32 %v1720_v40  ;;  %v1620_v43 = vpop.permute.xlu1 %1619  ;;  %v2777_v40 = vpack.c.bf16 %v2034_v39, %v2033_v17 }
0x14cc   :  { %v1622_v44 = vadd.f32 %v1620_v43, %v1604_v24  ;;  %v2035_v43 = vld [vmem:[%s3516_s10 + $0x20] sm:$0xff] }
0x14ce   :  { %2883 = vtanh.f32 %v1622_v44  ;;  %v2036_v44 = vld [vmem:[%s3516_s10 + $0x28] sm:$0xff] }
0x14cf   :  { %2885 = vtanh.f32 %v1909_v52  ;;  %v2783_v52 = vpack.c.bf16 %v2038_v42, %v2037_v8 }
0x14d0   :  { %2887 = vpow2.f32 %v2178_v4 }
0x14d5   :  { %v2882_v45 = vpop.eup %2881 }
0x14d6   :  { %1724 = vrot.lane.b32.xlu0 %v2882_v45, %s2958_s4  ;;  %v2780_v45 = vpack.c.bf16 %v2036_v44, %v2035_v43 }
0x14d8   :  { %v2884_v47 = vpop.eup %2883 }
0x14d9   :  { %1626 = vrot.lane.b32.xlu1 %v2884_v47, %s2958_s4  ;;  %v2886_v49 = vpop.eup %2885 }
0x14da   :  { %v2888_v53 = vpop.eup %2887 }
0x14db   :  { %v1915_v5 = vadd.f32 1.0, %v2888_v53 }
0x14dd   :  { %1921 = vrot.lane.b32.xlu1 %v2886_v49, %s2958_s4  ;;  %2889 = vrcp.f32 %v1915_v5 }
0x14e7   :  { %v2890_v6 = vpop.eup %2889 }
0x14e8   :  { %v1919_v9 = vsub.f32 1.0, %v2890_v6 }
0x1548   :  { %v1725_v63 = vpop.permute.xlu0 %1724 }
0x1549   :  { %v1727_v3 = vmul.f32 %v1725_v63, %v1722_v62  ;;  %v2182_v62 = vld [vmem:[%s3517_s11] ss:$0 sm:$0xff] }
0x154b   :  { %v1729_v57 = vadd.f32 %v1728_v2, %v1727_v3  ;;  %v1627_v7 = vpop.permute.xlu1 %1626 }
0x154c   :  { %v1629_v15 = vmul.f32 %v1627_v7, %v1624_v14 }
0x154d   :  { %1731 = vrot.lane.b32.xlu0 %v1729_v57, %s2958_s4 }
0x154e   :  { %v1631_v54 = vadd.f32 %v1630_v16, %v1629_v15 }
0x154f   :  { %v1922_v10 = vpop.permute.xlu1 %1921 }
0x1550   :  { %v1924_v11 = vmul.f32 %v1922_v10, %v1919_v9 }
0x1552   :  { %2595 = vmatmul.mubr.msk.f32.vlgmr.msra.gmra.mrb[22].mxu0 %vm214_vm2, %v1924_v11 }
0x1553   :  { %2613 = vmatprep.mubr.msk.f32.mxu0 %vm2955_vm0, %v2956_v1  ;;  %2775 = vmatpush3.bf16.msra.mxu0 %v2774_v56 }
0x1554   :  { %2776 = vmatprep.subr.bf16.mxu0 %v2954_v0 }
0x1557   :  { %2778 = vmatpush3.bf16.msra.mxu0 %v2777_v40 }
0x1558   :  { %2779 = vmatprep.subr.bf16.mxu0 %v2954_v0 }
0x155b   :  { %2781 = vmatpush3.bf16.msra.mxu0 %v2780_v45 }
0x155c   :  { %2782 = vmatprep.subr.bf16.mxu0 %v2954_v0 }
0x155f   :  { %2784 = vmatpush3.bf16.msra.mxu0 %v2783_v52 }
0x15bf   :  { %v1732_v18 = vpop.permute.xlu0 %1731 }
0x15c0   :  { %v1734_v19 = vsel %vm214_vm2, %v1732_v18, %v1631_v54 }
0x15c1   :  { %2577 = vmatmul.mubr.msk.f32.vlgmr.msra.gmra.mrb[18].mxu1 %vm327_vm3, %v1734_v19 }
0x1625   :  { %v2005_v21 = vpop.f32.mrb[22].mxu0 }
0x1626   :  { %v2596_v13 = vpop.f32.mrb[23].mxu0  ;;  %v2006_v36 = vadd.f32 %v2179_v20, %v2005_v21 }
0x1628   :  { %v2181_v28 = vmul.f32 -1.442695, %v2006_v36 }
0x1694   :  { %v1804_v22 = vpop.f32.mrb[18].mxu1 }
0x1695   :  { %v1805_v31 = vadd.f32 %v3205_v60, %v1804_v22  ;;  %v2578_v23 = vpop.f32.mrb[19].mxu1 }
0x1697   :  { %1815 = vrot.lane.b32.xlu0 %v1805_v31, %s2959_s21  ;;  %v2175_v24 = vmul.f32 -1.442695, %v1805_v31 }
0x1699   :  { %2891 = vpow2.f32 %v2175_v24 }
0x16a3   :  { %v2892_v1 = vpop.eup %2891 }
0x16a4   :  { %v1811_v25 = vadd.f32 1.0, %v2892_v1 }
0x16a6   :  { %2893 = vrcp.f32 %v1811_v25 }
0x16a7   :  { %2895 = vtanh.f32 %v2006_v36 }
0x16a8   :  { %2897 = vpow2.f32 %v2181_v28 }
0x16b0   :  { %v2894_v26 = vpop.eup %2893 }
0x16b1   :  { %v2896_v60 = vpop.eup %2895  ;;  %v1825_v48 = vsub.f32 1.0, %v2894_v26  ;;  %v1831_v12 = vmul.f32 %v2894_v26, %v1631_v54 }
0x16b2   :  { %v2898_v46 = vpop.eup %2897 }
0x16b3   :  { %v2012_v29 = vadd.f32 1.0, %v2898_v46 }
0x16b5   :  { %2899 = vrcp.f32 %v2012_v29 }
0x16bf   :  { %v2900_v30 = vpop.eup %2899 }
0x16c0   :  { %v2016_v33 = vsub.f32 1.0, %v2900_v30 }
0x1709   :  { %v1816_v27 = vpop.permute.xlu0 %1815 }
0x170a   :  { %v1818_v41 = vmul.f32 %v2894_v26, %v1816_v27 }
0x170c   :  { %1820 = vrot.lane.b32.xlu1 %v1818_v41, %s2957_s2 }
0x1710   :  { %2018 = vrot.lane.b32.xlu1 %v2896_v60, %s2958_s4 }
0x177e   :  { %v1821_v55 = vpop.permute.xlu1 %1820 }
0x177f   :  { %v1823_v32 = vadd.f32 %v1821_v55, %v1805_v31 }
0x1781   :  { %2901 = vtanh.f32 %v1823_v32 }
0x1782   :  { %v2019_v34 = vpop.permute.xlu1 %2018 }
0x1783   :  { %v2021_v35 = vmul.f32 %v2019_v34, %v2016_v33 }
0x1785   :  { %2027 = vrot.lane.b32.xlu1 %v2021_v35, %s2959_s21 }
0x178b   :  { %v2902_v47 = vpop.eup %2901 }
0x178c   :  { %1827 = vrot.lane.b32.xlu0 %v2902_v47, %s2958_s4 }
0x17f7   :  { %v2028_v58 = vpop.permute.xlu1 %2027 }
0x17fe   :  { %v1828_v49 = vpop.permute.xlu0 %1827 }
0x17ff   :  { %v1830_v50 = vmul.f32 %v1828_v49, %v1825_v48 }
0x1801   :  { %v1832_v51 = vadd.f32 %v1831_v12, %v1830_v50 }
0x1803   :  { %2023 = vrot.lane.b32.xlu0 %v1832_v51, %s2958_s4 }
0x1875   :  { %v2024_v59 = vpop.permute.xlu0 %2023 }
0x1876   :  { %v2030_v61 = vsel %vm214_vm2, %v2024_v59, %v2028_v58 }
0x1877   :  { %2614 = vmatmul.mubr.msk.f32.vlgmr.msra.gmra.mrb[24].mxu0 %vm327_vm3, %v2030_v61 }
0x194a   :  { %v2115_v0 = vpop.f32.mrb[24].mxu0 }
0x194b   :  { %v2116_v63 = vadd.f32 %v2182_v62, %v2115_v0  ;;  %v2615_v2 = vpop.f32.mrb[25].mxu0 }
0x194d   :  { %2119 = vst.msk [vmem:[#allocation5] sm:$0xff] %vm214_vm2, %v2116_v63 }
0x194e   :  { %2936 = shalt.err (!%p2933_p12)
}
0x194f   :  { %s2937_s27 = scalar_lea.hbm %s3518_s12, 128 }
0x1950   :  { %p2938_p13 = scmp.ne.s32.totalorder %s3518_s12, %s2937_s27  ;;  %p2941_p0 = scmp.lt.u32.totalorder %s2937_s27, %s3518_s12 }
0x1952   :  { %p2943_p1 = pnand %p2941_p0, %p2938_p13 }
0x1954   :  { %2946 = shalt.err (!%p2943_p1)
}
0x1955   :  { %2129 = dma.vmem_to_hbm [thread:$0]  %s2127_s24, 128, %s3518_s12, [#allocation4]  }
0x1956   :  { %2949 = dma.done.wait [#allocation4], 128  }
0x1957   :  { %2950 = vsyncadd [#allocation4], 4294967168 }
0x1958   :  { %2133 = vsyncpa [#allocation3], 1 }
0x1959   :  { %2134 = vsyncpa [#allocation4], 1 }

</bundles_post_ra>
